<compile_context>
chip_gen: v5e
topology: v5e:2x2
jax: 0.10.0
libtpu: 0.0.40
codegen_flags: <defaults>
</compile_context>

<pallas_src>
import jax
import jax.numpy as jnp
import numpy as np
from jax.experimental import pallas as pl
from jax.experimental.pallas import tpu as pltpu


# ----------------------------------------------------------------------------
# Pallas kernel: G graphs per grid step, fully in VMEM
# ----------------------------------------------------------------------------
def graph_encoder_kernel(sym_ref, w0_ref, wr_ref, b_ref, watt_ref, out_ref):
    """sym_ref  : [G, N, N]  lower + lower^T (raw weights, both triangles)
       w0_ref   : [1, F]     layer-0 weight (input feature dim == 1)
       wr_ref   : [L-1,F,F]  remaining GCN weights
       b_ref    : [L, F]     GCN biases
       watt_ref : [F, F]     attention weight
       out_ref  : [G, N, 2F] state_feat
    """
    G, N, _ = sym_ref.shape
    F = watt_ref.shape[0]
    num_layers = b_ref.shape[0]

    row = jax.lax.broadcasted_iota(jnp.int32, (N, N), 0)
    col = jax.lax.broadcasted_iota(jnp.int32, (N, N), 1)
    off_diag = row != col
    eye = (row == col).astype(jnp.float32)

    w0_row = w0_ref[...]                 # [1, F]
    b0 = b_ref[pl.ds(0, 1), :]           # [1, F]

    # --- fused graph construction + GCN layer 0 (per graph, VPU/EUP work) ---
    a_norm = []        # list of [N, N] normalized adjacencies
    h_parts = []       # list of [N, F] layer-0 activations
    for g in range(G):
        s = sym_ref[g]                                         # [N, N]
        keep = off_diag & (s != 0.0) & (s < 2.0)               # valid edges
        adj = jnp.where(keep, s, 0.0)                          # symmetric A
        # x0 = 1 + sum of incident weights; with unit self-loops deg == x0.
        x0_col = 1.0 + jnp.sum(adj, axis=1, keepdims=True)     # [N, 1]
        x0_row = 1.0 + jnp.sum(adj, axis=0, keepdims=True)     # [1, N] (same vals)
        dinv_c = 1.0 / jnp.sqrt(x0_col)
        dinv_r = 1.0 / jnp.sqrt(x0_row)
        a_norm.append(dinv_c * (adj + eye) * dinv_r)           # D^-1/2 (A+I) D^-1/2
        # layer 0: F_in == 1  ->  h0 W0 is a VPU outer product (no MXU, no pad)
        hw0 = x0_col * w0_row                                  # [N, F]
        agg = jnp.dot(a_norm[g], hw0, preferred_element_type=jnp.float32)
        h_parts.append(jnp.maximum(agg + b0, 0.0))

    h_flat = jnp.concatenate(h_parts, axis=0)                  # [G*N, F]

    # --- GCN layers 1..L-1: one big feature matmul (M = G*N), per-graph agg ---
    for l in range(1, num_layers):
        w_l = wr_ref[l - 1]                                    # [F, F]
        b_l = b_ref[pl.ds(l, 1), :]                            # [1, F]
        hw = jnp.dot(h_flat, w_l, preferred_element_type=jnp.float32)  # [G*N, F]
        parts = []
        for g in range(G):
            agg = jnp.dot(a_norm[g], hw[g * N:(g + 1) * N, :],
                          preferred_element_type=jnp.float32)
            parts.append(jnp.maximum(agg + b_l, 0.0))
        h_flat = jnp.concatenate(parts, axis=0)                # [G*N, F]

    # --- GraphAttentionPooling, batched over the G graphs -------------------
    inv_n = 1.0 / N
    mean_rows = jnp.concatenate(
        [jnp.broadcast_to(
            jnp.sum(h_flat[g * N:(g + 1) * N, :], axis=0, keepdims=True) * inv_n,
            (N, F)) for g in range(G)],
        axis=0)                                                # [G*N, F]
    tg_rows = jnp.tanh(jnp.dot(mean_rows, watt_ref[...],
                               preferred_element_type=jnp.float32))  # [G*N, F]
    coefs = jax.nn.sigmoid(jnp.sum(h_flat * tg_rows, axis=1, keepdims=True))
    weighted = coefs * h_flat                                  # [G*N, F]

    # --- state_feat = [h | graph_feat], written directly (no concat copy) ---
    for g in range(G):
        gfeat = jnp.sum(weighted[g * N:(g + 1) * N, :], axis=0, keepdims=True)
        out_ref[g, :, 0:F] = h_flat[g * N:(g + 1) * N, :]
        out_ref[g, :, F:2 * F] = jnp.broadcast_to(gfeat, (N, F))


# ----------------------------------------------------------------------------
# Wrapper
# ----------------------------------------------------------------------------
def graph_encoder_forward(lower, params, *, num_layers, node_output_size,
                          graphs_per_block=4):
    B, N, _ = lower.shape
    F = node_output_size
    G = graphs_per_block
    assert num_layers >= 2
    assert B % G == 0, "batch must be divisible by graphs_per_block"
    assert params["w0"].shape[0] == 1, "layer-0 outer-product path needs F_in == 1"
    num_blocks = B // G

    # Layout plumbing only: fold the two triangles together so the kernel does
    # all masking / normalization itself without an in-kernel NxN transpose.
    # For a strictly-lower-triangular input, sym[i, j] == weight of edge {i, j}.
    sym_lower = (lower + jnp.swapaxes(lower, 1, 2)).astype(jnp.float32)

    # VMEM guard (keeps per-step footprint portable to v7x's 64 MiB VMEM).
    block_bytes = 4 * (2 * G * N * N                       # sym block (2 bufs)
                       + 2 * G * N * 2 * F                 # out block (2 bufs)
                       + 2 * ((num_layers - 1) * F * F
                              + num_layers * F + F * F + F))   # resident weights
    assert block_bytes < (8 << 20), (
        "per-step block too large; reduce graphs_per_block or tile N")

    out = pl.pallas_call(
        graph_encoder_kernel,
        out_shape=jax.ShapeDtypeStruct((B, N, 2 * F), jnp.float32),
        grid_spec=pltpu.PrefetchScalarGridSpec(
            num_scalar_prefetch=0,
            grid=(num_blocks,),
            in_specs=[
                pl.BlockSpec((G, N, N), lambda b: (b, 0, 0)),               # sym adj
                pl.BlockSpec((1, F), lambda b: (0, 0)),                     # W0
                pl.BlockSpec((num_layers - 1, F, F), lambda b: (0, 0, 0)),  # W1..L-1
                pl.BlockSpec((num_layers, F), lambda b: (0, 0)),            # biases
                pl.BlockSpec((F, F), lambda b: (0, 0)),                     # W_att
            ],
            out_specs=pl.BlockSpec((G, N, 2 * F), lambda b: (b, 0, 0)),
        ),
        compiler_params=pltpu.CompilerParams(
            dimension_semantics=("parallel",)),
    )(sym_lower, params["w0"], params["wrest"], params["b"], params["watt"])
    return out


# ----------------------------------------------------------------------------
# Pure-JAX reference (same math, no Pallas) for validation
# ----------------------------------------------------------------------------
def _build_dense_graph(lower):
    B, N, _ = lower.shape
    tril = jnp.tril(jnp.ones((N, N), jnp.float32), k=-1)
    keep = (lower != 0) & (lower < 2)
    w = jnp.where(keep, lower, 0.0).astype(jnp.float32) * tril
    adj = w + jnp.swapaxes(w, -1, -2)
    x0 = 1.0 + jnp.sum(adj, axis=-1, keepdims=True)
    a_hat = adj + jnp.eye(N, dtype=jnp.float32)[None]
    deg = jnp.sum(a_hat, axis=-1)
    dinv = 1.0 / jnp.sqrt(deg)
    a_norm = dinv[:, :, None] * a_hat * dinv[:, None, :]
    return a_norm, x0


def graph_encoder_reference(lower, params, *, num_layers):
    a_norm, x0 = _build_dense_graph(lower)
    h = x0
    weights = [params["w0"]] + [params["wrest"][i] for i in range(num_layers - 1)]
    for l in range(num_layers):
        h = jnp.einsum("bnm,bmf->bnf", a_norm, h @ weights[l]) + params["b"][l]
        h = jnp.maximum(h, 0.0)
    mean = jnp.mean(h, axis=1)                                   # [B, F]
    tg = jnp.tanh(mean @ params["watt"])                         # [B, F]
    coefs = jax.nn.sigmoid(jnp.sum(h * tg[:, None, :], axis=-1, keepdims=True))
    gfeat = jnp.sum(coefs * h, axis=1)                           # [B, F]
    return jnp.concatenate(
        [h, jnp.broadcast_to(gfeat[:, None, :], h.shape)], axis=-1)


# ----------------------------------------------------------------------------
if __name__ == "__main__":
    # Config consistent with GraphEncoder(node_feature_dim=1,
    # node_output_size=32, batch_norm=False, one_hot_degree=0, num_layers=3).
    B, N = 8, 8
    NODE_FEATURE_DIM = 1
    NODE_OUTPUT_SIZE = 32
    NUM_LAYERS = 3
    GRAPHS_PER_BLOCK = 4       # grid has B/G = 2 parallel steps (both v7x TCs)

    key = jax.random.PRNGKey(0)
    k_in, k0, kr, kb, ka = jax.random.split(key, 5)

    # Synthetic strictly-lower-triangular weight matrices.
    lower = jax.random.uniform(k_in, (B, N, N), minval=0.0, maxval=3.0)
    lower = (lower * jnp.tril(jnp.ones((N, N)), k=-1)).astype(jnp.float32)

    F = NODE_OUTPUT_SIZE
    params = {
        "w0": 0.1 * jax.random.normal(k0, (NODE_FEATURE_DIM, F), jnp.float32),
        "wrest": 0.1 * jax.random.normal(kr, (NUM_LAYERS - 1, F, F), jnp.float32),
        "b": 0.01 * jax.random.normal(kb, (NUM_LAYERS, F), jnp.float32),
        "watt": 0.1 * jax.random.normal(ka, (F, F), jnp.float32),
    }

    out = graph_encoder_forward(
        lower, params, num_layers=NUM_LAYERS, node_output_size=F,
        graphs_per_block=GRAPHS_PER_BLOCK)
    out = jax.block_until_ready(out)

    ref = graph_encoder_reference(lower, params, num_layers=NUM_LAYERS)
    np.testing.assert_allclose(np.asarray(out), np.asarray(ref),
                               rtol=1e-4, atol=1e-5)
    assert out.shape == (B, N, 2 * F)

    print("KERNEL_OK")
</pallas_src>

<mosaic_0001>
module attributes {stable_mosaic.version = 11 : i64} {
  func.func @graph_encoder_kernel(%arg0: i32, %arg1: memref<4x8x8xf32, #tpu.memory_space<vmem>>, %arg2: memref<1x32xf32, #tpu.memory_space<vmem>>, %arg3: memref<2x32x32xf32, #tpu.memory_space<vmem>>, %arg4: memref<3x32xf32, #tpu.memory_space<vmem>>, %arg5: memref<32x32xf32, #tpu.memory_space<vmem>>, %arg6: memref<4x8x64xf32, #tpu.memory_space<vmem>>) attributes {dimension_semantics = [#tpu.dimension_semantics<parallel>], iteration_bounds = array<i64: 2>, scalar_prefetch = 0 : i64, scratch_operands = 0 : i64, tpu.core_type = #tpu.core_type<tc>, window_params = [{transform_indices = @transform_0, window_bounds = array<i64: 4, 8, 8>}, {pipeline_mode = #tpu.pipeline_mode<synchronous>, transform_indices = @transform_1, window_bounds = array<i64: 1, 32>}, {pipeline_mode = #tpu.pipeline_mode<synchronous>, transform_indices = @transform_2, window_bounds = array<i64: 2, 32, 32>}, {pipeline_mode = #tpu.pipeline_mode<synchronous>, transform_indices = @transform_3, window_bounds = array<i64: 3, 32>}, {pipeline_mode = #tpu.pipeline_mode<synchronous>, transform_indices = @transform_4, window_bounds = array<i64: 32, 32>}, {transform_indices = @transform_5, window_bounds = array<i64: 4, 8, 64>}]} {
    %0 = tpu.iota {dimensions = array<i32: 0>} : vector<8x8xi32>
    %1 = tpu.iota {dimensions = array<i32: 1>} : vector<8x8xi32>
    %2 = arith.cmpi ne, %0, %1 : vector<8x8xi32>
    %3 = arith.cmpi eq, %0, %1 : vector<8x8xi32>
    %4 = arith.extui %3 : vector<8x8xi1> to vector<8x8xi32>
    %5 = arith.sitofp %4 : vector<8x8xi32> to vector<8x8xf32>
    %c0 = arith.constant 0 : index
    %c0_0 = arith.constant 0 : index
    %6 = vector.load %arg2[%c0, %c0_0] : memref<1x32xf32, #tpu.memory_space<vmem>>, vector<1x32xf32>
    %c0_1 = arith.constant 0 : index
    %c0_2 = arith.constant 0 : index
    %7 = vector.load %arg4[%c0_1, %c0_2] : memref<3x32xf32, #tpu.memory_space<vmem>>, vector<1x32xf32>
    %c0_3 = arith.constant 0 : index
    %c0_4 = arith.constant 0 : index
    %c0_5 = arith.constant 0 : index
    %8 = vector.load %arg1[%c0_3, %c0_4, %c0_5] : memref<4x8x8xf32, #tpu.memory_space<vmem>>, vector<1x8x8xf32>
    %9 = vector.shape_cast %8 : vector<1x8x8xf32> to vector<8x8xf32>
    %cst = arith.constant 0.000000e+00 : f32
    %10 = vector.broadcast %cst : f32 to vector<8x8xf32>
    %11 = arith.cmpf one, %9, %10 : vector<8x8xf32>
    %12 = arith.andi %2, %11 : vector<8x8xi1>
    %cst_6 = arith.constant 2.000000e+00 : f32
    %13 = vector.broadcast %cst_6 : f32 to vector<8x8xf32>
    %14 = arith.cmpf olt, %9, %13 : vector<8x8xf32>
    %15 = arith.andi %12, %14 : vector<8x8xi1>
    %cst_7 = arith.constant 0.000000e+00 : f32
    %16 = vector.broadcast %cst_7 : f32 to vector<8x8xf32>
    %17 = arith.select %15, %9, %16 : vector<8x8xi1>, vector<8x8xf32>
    %cst_8 = arith.constant dense<0.000000e+00> : vector<8xf32>
    %18 = vector.multi_reduction <add>, %17, %cst_8 [1] : vector<8x8xf32> to vector<8xf32>
    %19 = vector.shape_cast %18 : vector<8xf32> to vector<8x1xf32>
    %cst_9 = arith.constant 1.000000e+00 : f32
    %20 = vector.broadcast %cst_9 : f32 to vector<8x1xf32>
    %21 = arith.addf %20, %19 : vector<8x1xf32>
    %cst_10 = arith.constant dense<0.000000e+00> : vector<8xf32>
    %22 = vector.multi_reduction <add>, %17, %cst_10 [0] : vector<8x8xf32> to vector<8xf32>
    %23 = vector.shape_cast %22 : vector<8xf32> to vector<1x8xf32>
    %cst_11 = arith.constant 1.000000e+00 : f32
    %24 = vector.broadcast %cst_11 : f32 to vector<1x8xf32>
    %25 = arith.addf %24, %23 : vector<1x8xf32>
    %26 = math.sqrt %21 : vector<8x1xf32>
    %cst_12 = arith.constant 1.000000e+00 : f32
    %27 = vector.broadcast %cst_12 : f32 to vector<8x1xf32>
    %28 = arith.divf %27, %26 : vector<8x1xf32>
    %29 = math.sqrt %25 : vector<1x8xf32>
    %cst_13 = arith.constant 1.000000e+00 : f32
    %30 = vector.broadcast %cst_13 : f32 to vector<1x8xf32>
    %31 = arith.divf %30, %29 : vector<1x8xf32>
    %32 = arith.addf %17, %5 : vector<8x8xf32>
    %33 = vector.broadcast %28 : vector<8x1xf32> to vector<8x8xf32>
    %34 = arith.mulf %33, %32 : vector<8x8xf32>
    %35 = vector.broadcast %31 : vector<1x8xf32> to vector<8x8xf32>
    %36 = arith.mulf %34, %35 : vector<8x8xf32>
    %37 = vector.broadcast %21 : vector<8x1xf32> to vector<8x32xf32>
    %38 = vector.broadcast %6 : vector<1x32xf32> to vector<8x32xf32>
    %39 = arith.mulf %37, %38 : vector<8x32xf32>
    %cst_14 = arith.constant dense<0.000000e+00> : vector<8x32xf32>
    %40 = tpu.matmul %36, %39, %cst_14 {dimension_numbers = #tpu.dot_dimension_numbers<[1], [0], [0], [1], [0, 0, 1, 1], [], []>} : vector<8x8xf32>, vector<8x32xf32>, vector<8x32xf32> -> vector<8x32xf32>
    %41 = vector.broadcast %7 : vector<1x32xf32> to vector<8x32xf32>
    %42 = arith.addf %40, %41 : vector<8x32xf32>
    %cst_15 = arith.constant 0.000000e+00 : f32
    %43 = vector.broadcast %cst_15 : f32 to vector<8x32xf32>
    %44 = arith.maximumf %42, %43 : vector<8x32xf32>
    %c1 = arith.constant 1 : index
    %c0_16 = arith.constant 0 : index
    %c0_17 = arith.constant 0 : index
    %45 = vector.load %arg1[%c1, %c0_16, %c0_17] : memref<4x8x8xf32, #tpu.memory_space<vmem>>, vector<1x8x8xf32>
    %46 = vector.shape_cast %45 : vector<1x8x8xf32> to vector<8x8xf32>
    %cst_18 = arith.constant 0.000000e+00 : f32
    %47 = vector.broadcast %cst_18 : f32 to vector<8x8xf32>
    %48 = arith.cmpf one, %46, %47 : vector<8x8xf32>
    %49 = arith.andi %2, %48 : vector<8x8xi1>
    %cst_19 = arith.constant 2.000000e+00 : f32
    %50 = vector.broadcast %cst_19 : f32 to vector<8x8xf32>
    %51 = arith.cmpf olt, %46, %50 : vector<8x8xf32>
    %52 = arith.andi %49, %51 : vector<8x8xi1>
    %cst_20 = arith.constant 0.000000e+00 : f32
    %53 = vector.broadcast %cst_20 : f32 to vector<8x8xf32>
    %54 = arith.select %52, %46, %53 : vector<8x8xi1>, vector<8x8xf32>
    %cst_21 = arith.constant dense<0.000000e+00> : vector<8xf32>
    %55 = vector.multi_reduction <add>, %54, %cst_21 [1] : vector<8x8xf32> to vector<8xf32>
    %56 = vector.shape_cast %55 : vector<8xf32> to vector<8x1xf32>
    %cst_22 = arith.constant 1.000000e+00 : f32
    %57 = vector.broadcast %cst_22 : f32 to vector<8x1xf32>
    %58 = arith.addf %57, %56 : vector<8x1xf32>
    %cst_23 = arith.constant dense<0.000000e+00> : vector<8xf32>
    %59 = vector.multi_reduction <add>, %54, %cst_23 [0] : vector<8x8xf32> to vector<8xf32>
    %60 = vector.shape_cast %59 : vector<8xf32> to vector<1x8xf32>
    %cst_24 = arith.constant 1.000000e+00 : f32
    %61 = vector.broadcast %cst_24 : f32 to vector<1x8xf32>
    %62 = arith.addf %61, %60 : vector<1x8xf32>
    %63 = math.sqrt %58 : vector<8x1xf32>
    %cst_25 = arith.constant 1.000000e+00 : f32
    %64 = vector.broadcast %cst_25 : f32 to vector<8x1xf32>
    %65 = arith.divf %64, %63 : vector<8x1xf32>
    %66 = math.sqrt %62 : vector<1x8xf32>
    %cst_26 = arith.constant 1.000000e+00 : f32
    %67 = vector.broadcast %cst_26 : f32 to vector<1x8xf32>
    %68 = arith.divf %67, %66 : vector<1x8xf32>
    %69 = arith.addf %54, %5 : vector<8x8xf32>
    %70 = vector.broadcast %65 : vector<8x1xf32> to vector<8x8xf32>
    %71 = arith.mulf %70, %69 : vector<8x8xf32>
    %72 = vector.broadcast %68 : vector<1x8xf32> to vector<8x8xf32>
    %73 = arith.mulf %71, %72 : vector<8x8xf32>
    %74 = vector.broadcast %58 : vector<8x1xf32> to vector<8x32xf32>
    %75 = vector.broadcast %6 : vector<1x32xf32> to vector<8x32xf32>
    %76 = arith.mulf %74, %75 : vector<8x32xf32>
    %cst_27 = arith.constant dense<0.000000e+00> : vector<8x32xf32>
    %77 = tpu.matmul %73, %76, %cst_27 {dimension_numbers = #tpu.dot_dimension_numbers<[1], [0], [0], [1], [0, 0, 1, 1], [], []>} : vector<8x8xf32>, vector<8x32xf32>, vector<8x32xf32> -> vector<8x32xf32>
    %78 = vector.broadcast %7 : vector<1x32xf32> to vector<8x32xf32>
    %79 = arith.addf %77, %78 : vector<8x32xf32>
    %cst_28 = arith.constant 0.000000e+00 : f32
    %80 = vector.broadcast %cst_28 : f32 to vector<8x32xf32>
    %81 = arith.maximumf %79, %80 : vector<8x32xf32>
    %c2 = arith.constant 2 : index
    %c0_29 = arith.constant 0 : index
    %c0_30 = arith.constant 0 : index
    %82 = vector.load %arg1[%c2, %c0_29, %c0_30] : memref<4x8x8xf32, #tpu.memory_space<vmem>>, vector<1x8x8xf32>
    %83 = vector.shape_cast %82 : vector<1x8x8xf32> to vector<8x8xf32>
    %cst_31 = arith.constant 0.000000e+00 : f32
    %84 = vector.broadcast %cst_31 : f32 to vector<8x8xf32>
    %85 = arith.cmpf one, %83, %84 : vector<8x8xf32>
    %86 = arith.andi %2, %85 : vector<8x8xi1>
    %cst_32 = arith.constant 2.000000e+00 : f32
    %87 = vector.broadcast %cst_32 : f32 to vector<8x8xf32>
    %88 = arith.cmpf olt, %83, %87 : vector<8x8xf32>
    %89 = arith.andi %86, %88 : vector<8x8xi1>
    %cst_33 = arith.constant 0.000000e+00 : f32
    %90 = vector.broadcast %cst_33 : f32 to vector<8x8xf32>
    %91 = arith.select %89, %83, %90 : vector<8x8xi1>, vector<8x8xf32>
    %cst_34 = arith.constant dense<0.000000e+00> : vector<8xf32>
    %92 = vector.multi_reduction <add>, %91, %cst_34 [1] : vector<8x8xf32> to vector<8xf32>
    %93 = vector.shape_cast %92 : vector<8xf32> to vector<8x1xf32>
    %cst_35 = arith.constant 1.000000e+00 : f32
    %94 = vector.broadcast %cst_35 : f32 to vector<8x1xf32>
    %95 = arith.addf %94, %93 : vector<8x1xf32>
    %cst_36 = arith.constant dense<0.000000e+00> : vector<8xf32>
    %96 = vector.multi_reduction <add>, %91, %cst_36 [0] : vector<8x8xf32> to vector<8xf32>
    %97 = vector.shape_cast %96 : vector<8xf32> to vector<1x8xf32>
    %cst_37 = arith.constant 1.000000e+00 : f32
    %98 = vector.broadcast %cst_37 : f32 to vector<1x8xf32>
    %99 = arith.addf %98, %97 : vector<1x8xf32>
    %100 = math.sqrt %95 : vector<8x1xf32>
    %cst_38 = arith.constant 1.000000e+00 : f32
    %101 = vector.broadcast %cst_38 : f32 to vector<8x1xf32>
    %102 = arith.divf %101, %100 : vector<8x1xf32>
    %103 = math.sqrt %99 : vector<1x8xf32>
    %cst_39 = arith.constant 1.000000e+00 : f32
    %104 = vector.broadcast %cst_39 : f32 to vector<1x8xf32>
    %105 = arith.divf %104, %103 : vector<1x8xf32>
    %106 = arith.addf %91, %5 : vector<8x8xf32>
    %107 = vector.broadcast %102 : vector<8x1xf32> to vector<8x8xf32>
    %108 = arith.mulf %107, %106 : vector<8x8xf32>
    %109 = vector.broadcast %105 : vector<1x8xf32> to vector<8x8xf32>
    %110 = arith.mulf %108, %109 : vector<8x8xf32>
    %111 = vector.broadcast %95 : vector<8x1xf32> to vector<8x32xf32>
    %112 = vector.broadcast %6 : vector<1x32xf32> to vector<8x32xf32>
    %113 = arith.mulf %111, %112 : vector<8x32xf32>
    %cst_40 = arith.constant dense<0.000000e+00> : vector<8x32xf32>
    %114 = tpu.matmul %110, %113, %cst_40 {dimension_numbers = #tpu.dot_dimension_numbers<[1], [0], [0], [1], [0, 0, 1, 1], [], []>} : vector<8x8xf32>, vector<8x32xf32>, vector<8x32xf32> -> vector<8x32xf32>
    %115 = vector.broadcast %7 : vector<1x32xf32> to vector<8x32xf32>
    %116 = arith.addf %114, %115 : vector<8x32xf32>
    %cst_41 = arith.constant 0.000000e+00 : f32
    %117 = vector.broadcast %cst_41 : f32 to vector<8x32xf32>
    %118 = arith.maximumf %116, %117 : vector<8x32xf32>
    %c3 = arith.constant 3 : index
    %c0_42 = arith.constant 0 : index
    %c0_43 = arith.constant 0 : index
    %119 = vector.load %arg1[%c3, %c0_42, %c0_43] : memref<4x8x8xf32, #tpu.memory_space<vmem>>, vector<1x8x8xf32>
    %120 = vector.shape_cast %119 : vector<1x8x8xf32> to vector<8x8xf32>
    %cst_44 = arith.constant 0.000000e+00 : f32
    %121 = vector.broadcast %cst_44 : f32 to vector<8x8xf32>
    %122 = arith.cmpf one, %120, %121 : vector<8x8xf32>
    %123 = arith.andi %2, %122 : vector<8x8xi1>
    %cst_45 = arith.constant 2.000000e+00 : f32
    %124 = vector.broadcast %cst_45 : f32 to vector<8x8xf32>
    %125 = arith.cmpf olt, %120, %124 : vector<8x8xf32>
    %126 = arith.andi %123, %125 : vector<8x8xi1>
    %cst_46 = arith.constant 0.000000e+00 : f32
    %127 = vector.broadcast %cst_46 : f32 to vector<8x8xf32>
    %128 = arith.select %126, %120, %127 : vector<8x8xi1>, vector<8x8xf32>
    %cst_47 = arith.constant dense<0.000000e+00> : vector<8xf32>
    %129 = vector.multi_reduction <add>, %128, %cst_47 [1] : vector<8x8xf32> to vector<8xf32>
    %130 = vector.shape_cast %129 : vector<8xf32> to vector<8x1xf32>
    %cst_48 = arith.constant 1.000000e+00 : f32
    %131 = vector.broadcast %cst_48 : f32 to vector<8x1xf32>
    %132 = arith.addf %131, %130 : vector<8x1xf32>
    %cst_49 = arith.constant dense<0.000000e+00> : vector<8xf32>
    %133 = vector.multi_reduction <add>, %128, %cst_49 [0] : vector<8x8xf32> to vector<8xf32>
    %134 = vector.shape_cast %133 : vector<8xf32> to vector<1x8xf32>
    %cst_50 = arith.constant 1.000000e+00 : f32
    %135 = vector.broadcast %cst_50 : f32 to vector<1x8xf32>
    %136 = arith.addf %135, %134 : vector<1x8xf32>
    %137 = math.sqrt %132 : vector<8x1xf32>
    %cst_51 = arith.constant 1.000000e+00 : f32
    %138 = vector.broadcast %cst_51 : f32 to vector<8x1xf32>
    %139 = arith.divf %138, %137 : vector<8x1xf32>
    %140 = math.sqrt %136 : vector<1x8xf32>
    %cst_52 = arith.constant 1.000000e+00 : f32
    %141 = vector.broadcast %cst_52 : f32 to vector<1x8xf32>
    %142 = arith.divf %141, %140 : vector<1x8xf32>
    %143 = arith.addf %128, %5 : vector<8x8xf32>
    %144 = vector.broadcast %139 : vector<8x1xf32> to vector<8x8xf32>
    %145 = arith.mulf %144, %143 : vector<8x8xf32>
    %146 = vector.broadcast %142 : vector<1x8xf32> to vector<8x8xf32>
    %147 = arith.mulf %145, %146 : vector<8x8xf32>
    %148 = vector.broadcast %132 : vector<8x1xf32> to vector<8x32xf32>
    %149 = vector.broadcast %6 : vector<1x32xf32> to vector<8x32xf32>
    %150 = arith.mulf %148, %149 : vector<8x32xf32>
    %cst_53 = arith.constant dense<0.000000e+00> : vector<8x32xf32>
    %151 = tpu.matmul %147, %150, %cst_53 {dimension_numbers = #tpu.dot_dimension_numbers<[1], [0], [0], [1], [0, 0, 1, 1], [], []>} : vector<8x8xf32>, vector<8x32xf32>, vector<8x32xf32> -> vector<8x32xf32>
    %152 = vector.broadcast %7 : vector<1x32xf32> to vector<8x32xf32>
    %153 = arith.addf %151, %152 : vector<8x32xf32>
    %cst_54 = arith.constant 0.000000e+00 : f32
    %154 = vector.broadcast %cst_54 : f32 to vector<8x32xf32>
    %155 = arith.maximumf %153, %154 : vector<8x32xf32>
    %156 = tpu.concatenate %44, %81, %118, %155 in 0 : vector<8x32xf32>, vector<8x32xf32>, vector<8x32xf32>, vector<8x32xf32> -> vector<32x32xf32>
    %c0_55 = arith.constant 0 : index
    %c0_56 = arith.constant 0 : index
    %c0_57 = arith.constant 0 : index
    %157 = vector.load %arg3[%c0_55, %c0_56, %c0_57] : memref<2x32x32xf32, #tpu.memory_space<vmem>>, vector<1x32x32xf32>
    %158 = vector.shape_cast %157 : vector<1x32x32xf32> to vector<32x32xf32>
    %c1_58 = arith.constant 1 : index
    %c0_59 = arith.constant 0 : index
    %159 = vector.load %arg4[%c1_58, %c0_59] : memref<3x32xf32, #tpu.memory_space<vmem>>, vector<1x32xf32>
    %cst_60 = arith.constant dense<0.000000e+00> : vector<32x32xf32>
    %160 = tpu.matmul %156, %158, %cst_60 {dimension_numbers = #tpu.dot_dimension_numbers<[1], [0], [0], [1], [0, 0, 1, 1], [], []>} : vector<32x32xf32>, vector<32x32xf32>, vector<32x32xf32> -> vector<32x32xf32>
    %161 = vector.extract_strided_slice %160 {offsets = [0, 0], sizes = [8, 32], strides = [1, 1]} : vector<32x32xf32> to vector<8x32xf32>
    %cst_61 = arith.constant dense<0.000000e+00> : vector<8x32xf32>
    %162 = tpu.matmul %36, %161, %cst_61 {dimension_numbers = #tpu.dot_dimension_numbers<[1], [0], [0], [1], [0, 0, 1, 1], [], []>} : vector<8x8xf32>, vector<8x32xf32>, vector<8x32xf32> -> vector<8x32xf32>
    %163 = vector.broadcast %159 : vector<1x32xf32> to vector<8x32xf32>
    %164 = arith.addf %162, %163 : vector<8x32xf32>
    %cst_62 = arith.constant 0.000000e+00 : f32
    %165 = vector.broadcast %cst_62 : f32 to vector<8x32xf32>
    %166 = arith.maximumf %164, %165 : vector<8x32xf32>
    %167 = vector.extract_strided_slice %160 {offsets = [8, 0], sizes = [8, 32], strides = [1, 1]} : vector<32x32xf32> to vector<8x32xf32>
    %cst_63 = arith.constant dense<0.000000e+00> : vector<8x32xf32>
    %168 = tpu.matmul %73, %167, %cst_63 {dimension_numbers = #tpu.dot_dimension_numbers<[1], [0], [0], [1], [0, 0, 1, 1], [], []>} : vector<8x8xf32>, vector<8x32xf32>, vector<8x32xf32> -> vector<8x32xf32>
    %169 = vector.broadcast %159 : vector<1x32xf32> to vector<8x32xf32>
    %170 = arith.addf %168, %169 : vector<8x32xf32>
    %cst_64 = arith.constant 0.000000e+00 : f32
    %171 = vector.broadcast %cst_64 : f32 to vector<8x32xf32>
    %172 = arith.maximumf %170, %171 : vector<8x32xf32>
    %173 = vector.extract_strided_slice %160 {offsets = [16, 0], sizes = [8, 32], strides = [1, 1]} : vector<32x32xf32> to vector<8x32xf32>
    %cst_65 = arith.constant dense<0.000000e+00> : vector<8x32xf32>
    %174 = tpu.matmul %110, %173, %cst_65 {dimension_numbers = #tpu.dot_dimension_numbers<[1], [0], [0], [1], [0, 0, 1, 1], [], []>} : vector<8x8xf32>, vector<8x32xf32>, vector<8x32xf32> -> vector<8x32xf32>
    %175 = vector.broadcast %159 : vector<1x32xf32> to vector<8x32xf32>
    %176 = arith.addf %174, %175 : vector<8x32xf32>
    %cst_66 = arith.constant 0.000000e+00 : f32
    %177 = vector.broadcast %cst_66 : f32 to vector<8x32xf32>
    %178 = arith.maximumf %176, %177 : vector<8x32xf32>
    %179 = vector.extract_strided_slice %160 {offsets = [24, 0], sizes = [8, 32], strides = [1, 1]} : vector<32x32xf32> to vector<8x32xf32>
    %cst_67 = arith.constant dense<0.000000e+00> : vector<8x32xf32>
    %180 = tpu.matmul %147, %179, %cst_67 {dimension_numbers = #tpu.dot_dimension_numbers<[1], [0], [0], [1], [0, 0, 1, 1], [], []>} : vector<8x8xf32>, vector<8x32xf32>, vector<8x32xf32> -> vector<8x32xf32>
    %181 = vector.broadcast %159 : vector<1x32xf32> to vector<8x32xf32>
    %182 = arith.addf %180, %181 : vector<8x32xf32>
    %cst_68 = arith.constant 0.000000e+00 : f32
    %183 = vector.broadcast %cst_68 : f32 to vector<8x32xf32>
    %184 = arith.maximumf %182, %183 : vector<8x32xf32>
    %185 = tpu.concatenate %166, %172, %178, %184 in 0 : vector<8x32xf32>, vector<8x32xf32>, vector<8x32xf32>, vector<8x32xf32> -> vector<32x32xf32>
    %c1_69 = arith.constant 1 : index
    %c0_70 = arith.constant 0 : index
    %c0_71 = arith.constant 0 : index
    %186 = vector.load %arg3[%c1_69, %c0_70, %c0_71] : memref<2x32x32xf32, #tpu.memory_space<vmem>>, vector<1x32x32xf32>
    %187 = vector.shape_cast %186 : vector<1x32x32xf32> to vector<32x32xf32>
    %c2_72 = arith.constant 2 : index
    %c0_73 = arith.constant 0 : index
    %188 = vector.load %arg4[%c2_72, %c0_73] : memref<3x32xf32, #tpu.memory_space<vmem>>, vector<1x32xf32>
    %cst_74 = arith.constant dense<0.000000e+00> : vector<32x32xf32>
    %189 = tpu.matmul %185, %187, %cst_74 {dimension_numbers = #tpu.dot_dimension_numbers<[1], [0], [0], [1], [0, 0, 1, 1], [], []>} : vector<32x32xf32>, vector<32x32xf32>, vector<32x32xf32> -> vector<32x32xf32>
    %190 = vector.extract_strided_slice %189 {offsets = [0, 0], sizes = [8, 32], strides = [1, 1]} : vector<32x32xf32> to vector<8x32xf32>
    %cst_75 = arith.constant dense<0.000000e+00> : vector<8x32xf32>
    %191 = tpu.matmul %36, %190, %cst_75 {dimension_numbers = #tpu.dot_dimension_numbers<[1], [0], [0], [1], [0, 0, 1, 1], [], []>} : vector<8x8xf32>, vector<8x32xf32>, vector<8x32xf32> -> vector<8x32xf32>
    %192 = vector.broadcast %188 : vector<1x32xf32> to vector<8x32xf32>
    %193 = arith.addf %191, %192 : vector<8x32xf32>
    %cst_76 = arith.constant 0.000000e+00 : f32
    %194 = vector.broadcast %cst_76 : f32 to vector<8x32xf32>
    %195 = arith.maximumf %193, %194 : vector<8x32xf32>
    %196 = vector.extract_strided_slice %189 {offsets = [8, 0], sizes = [8, 32], strides = [1, 1]} : vector<32x32xf32> to vector<8x32xf32>
    %cst_77 = arith.constant dense<0.000000e+00> : vector<8x32xf32>
    %197 = tpu.matmul %73, %196, %cst_77 {dimension_numbers = #tpu.dot_dimension_numbers<[1], [0], [0], [1], [0, 0, 1, 1], [], []>} : vector<8x8xf32>, vector<8x32xf32>, vector<8x32xf32> -> vector<8x32xf32>
    %198 = vector.broadcast %188 : vector<1x32xf32> to vector<8x32xf32>
    %199 = arith.addf %197, %198 : vector<8x32xf32>
    %cst_78 = arith.constant 0.000000e+00 : f32
    %200 = vector.broadcast %cst_78 : f32 to vector<8x32xf32>
    %201 = arith.maximumf %199, %200 : vector<8x32xf32>
    %202 = vector.extract_strided_slice %189 {offsets = [16, 0], sizes = [8, 32], strides = [1, 1]} : vector<32x32xf32> to vector<8x32xf32>
    %cst_79 = arith.constant dense<0.000000e+00> : vector<8x32xf32>
    %203 = tpu.matmul %110, %202, %cst_79 {dimension_numbers = #tpu.dot_dimension_numbers<[1], [0], [0], [1], [0, 0, 1, 1], [], []>} : vector<8x8xf32>, vector<8x32xf32>, vector<8x32xf32> -> vector<8x32xf32>
    %204 = vector.broadcast %188 : vector<1x32xf32> to vector<8x32xf32>
    %205 = arith.addf %203, %204 : vector<8x32xf32>
    %cst_80 = arith.constant 0.000000e+00 : f32
    %206 = vector.broadcast %cst_80 : f32 to vector<8x32xf32>
    %207 = arith.maximumf %205, %206 : vector<8x32xf32>
    %208 = vector.extract_strided_slice %189 {offsets = [24, 0], sizes = [8, 32], strides = [1, 1]} : vector<32x32xf32> to vector<8x32xf32>
    %cst_81 = arith.constant dense<0.000000e+00> : vector<8x32xf32>
    %209 = tpu.matmul %147, %208, %cst_81 {dimension_numbers = #tpu.dot_dimension_numbers<[1], [0], [0], [1], [0, 0, 1, 1], [], []>} : vector<8x8xf32>, vector<8x32xf32>, vector<8x32xf32> -> vector<8x32xf32>
    %210 = vector.broadcast %188 : vector<1x32xf32> to vector<8x32xf32>
    %211 = arith.addf %209, %210 : vector<8x32xf32>
    %cst_82 = arith.constant 0.000000e+00 : f32
    %212 = vector.broadcast %cst_82 : f32 to vector<8x32xf32>
    %213 = arith.maximumf %211, %212 : vector<8x32xf32>
    %214 = tpu.concatenate %195, %201, %207, %213 in 0 : vector<8x32xf32>, vector<8x32xf32>, vector<8x32xf32>, vector<8x32xf32> -> vector<32x32xf32>
    %215 = vector.extract_strided_slice %214 {offsets = [0, 0], sizes = [8, 32], strides = [1, 1]} : vector<32x32xf32> to vector<8x32xf32>
    %cst_83 = arith.constant dense<0.000000e+00> : vector<32xf32>
    %216 = vector.multi_reduction <add>, %215, %cst_83 [0] : vector<8x32xf32> to vector<32xf32>
    %217 = vector.shape_cast %216 : vector<32xf32> to vector<1x32xf32>
    %cst_84 = arith.constant 1.250000e-01 : f32
    %218 = vector.broadcast %cst_84 : f32 to vector<1x32xf32>
    %219 = arith.mulf %217, %218 : vector<1x32xf32>
    %220 = vector.shape_cast %219 : vector<1x32xf32> to vector<1x32xf32>
    %221 = vector.broadcast %220 : vector<1x32xf32> to vector<8x32xf32>
    %222 = vector.extract_strided_slice %214 {offsets = [8, 0], sizes = [8, 32], strides = [1, 1]} : vector<32x32xf32> to vector<8x32xf32>
    %cst_85 = arith.constant dense<0.000000e+00> : vector<32xf32>
    %223 = vector.multi_reduction <add>, %222, %cst_85 [0] : vector<8x32xf32> to vector<32xf32>
    %224 = vector.shape_cast %223 : vector<32xf32> to vector<1x32xf32>
    %cst_86 = arith.constant 1.250000e-01 : f32
    %225 = vector.broadcast %cst_86 : f32 to vector<1x32xf32>
    %226 = arith.mulf %224, %225 : vector<1x32xf32>
    %227 = vector.shape_cast %226 : vector<1x32xf32> to vector<1x32xf32>
    %228 = vector.broadcast %227 : vector<1x32xf32> to vector<8x32xf32>
    %229 = vector.extract_strided_slice %214 {offsets = [16, 0], sizes = [8, 32], strides = [1, 1]} : vector<32x32xf32> to vector<8x32xf32>
    %cst_87 = arith.constant dense<0.000000e+00> : vector<32xf32>
    %230 = vector.multi_reduction <add>, %229, %cst_87 [0] : vector<8x32xf32> to vector<32xf32>
    %231 = vector.shape_cast %230 : vector<32xf32> to vector<1x32xf32>
    %cst_88 = arith.constant 1.250000e-01 : f32
    %232 = vector.broadcast %cst_88 : f32 to vector<1x32xf32>
    %233 = arith.mulf %231, %232 : vector<1x32xf32>
    %234 = vector.shape_cast %233 : vector<1x32xf32> to vector<1x32xf32>
    %235 = vector.broadcast %234 : vector<1x32xf32> to vector<8x32xf32>
    %236 = vector.extract_strided_slice %214 {offsets = [24, 0], sizes = [8, 32], strides = [1, 1]} : vector<32x32xf32> to vector<8x32xf32>
    %cst_89 = arith.constant dense<0.000000e+00> : vector<32xf32>
    %237 = vector.multi_reduction <add>, %236, %cst_89 [0] : vector<8x32xf32> to vector<32xf32>
    %238 = vector.shape_cast %237 : vector<32xf32> to vector<1x32xf32>
    %cst_90 = arith.constant 1.250000e-01 : f32
    %239 = vector.broadcast %cst_90 : f32 to vector<1x32xf32>
    %240 = arith.mulf %238, %239 : vector<1x32xf32>
    %241 = vector.shape_cast %240 : vector<1x32xf32> to vector<1x32xf32>
    %242 = vector.broadcast %241 : vector<1x32xf32> to vector<8x32xf32>
    %243 = tpu.concatenate %221, %228, %235, %242 in 0 : vector<8x32xf32>, vector<8x32xf32>, vector<8x32xf32>, vector<8x32xf32> -> vector<32x32xf32>
    %c0_91 = arith.constant 0 : index
    %c0_92 = arith.constant 0 : index
    %244 = vector.load %arg5[%c0_91, %c0_92] : memref<32x32xf32, #tpu.memory_space<vmem>>, vector<32x32xf32>
    %cst_93 = arith.constant dense<0.000000e+00> : vector<32x32xf32>
    %245 = tpu.matmul %243, %244, %cst_93 {dimension_numbers = #tpu.dot_dimension_numbers<[1], [0], [0], [1], [0, 0, 1, 1], [], []>} : vector<32x32xf32>, vector<32x32xf32>, vector<32x32xf32> -> vector<32x32xf32>
    %246 = math.tanh %245 : vector<32x32xf32>
    %247 = arith.mulf %214, %246 : vector<32x32xf32>
    %cst_94 = arith.constant dense<0.000000e+00> : vector<32xf32>
    %248 = vector.multi_reduction <add>, %247, %cst_94 [1] : vector<32x32xf32> to vector<32xf32>
    %249 = vector.shape_cast %248 : vector<32xf32> to vector<32x1xf32>
    %250 = arith.negf %249 : vector<32x1xf32>
    %251 = math.exp %250 : vector<32x1xf32>
    %cst_95 = arith.constant 1.000000e+00 : f32
    %252 = vector.broadcast %cst_95 : f32 to vector<32x1xf32>
    %253 = arith.addf %252, %251 : vector<32x1xf32>
    %254 = arith.divf %252, %253 : vector<32x1xf32>
    %255 = vector.broadcast %254 : vector<32x1xf32> to vector<32x32xf32>
    %256 = arith.mulf %255, %214 : vector<32x32xf32>
    %257 = vector.extract_strided_slice %256 {offsets = [0, 0], sizes = [8, 32], strides = [1, 1]} : vector<32x32xf32> to vector<8x32xf32>
    %cst_96 = arith.constant dense<0.000000e+00> : vector<32xf32>
    %258 = vector.multi_reduction <add>, %257, %cst_96 [0] : vector<8x32xf32> to vector<32xf32>
    %259 = vector.shape_cast %258 : vector<32xf32> to vector<1x32xf32>
    %260 = vector.extract_strided_slice %214 {offsets = [0, 0], sizes = [8, 32], strides = [1, 1]} : vector<32x32xf32> to vector<8x32xf32>
    %c0_97 = arith.constant 0 : index
    %c0_98 = arith.constant 0 : index
    %c0_99 = arith.constant 0 : index
    %261 = vector.load %arg6[%c0_97, %c0_98, %c0_99] : memref<4x8x64xf32, #tpu.memory_space<vmem>>, vector<1x8x32xf32>
    %262 = vector.shape_cast %261 : vector<1x8x32xf32> to vector<8x32xf32>
    %263 = vector.shape_cast %260 : vector<8x32xf32> to vector<1x8x32xf32>
    tpu.vector_store %arg6[%c0_97, %c0_98, %c0_99], %263 {strides = array<i32>} : memref<4x8x64xf32, #tpu.memory_space<vmem>>, vector<1x8x32xf32>,
    %264 = vector.shape_cast %259 : vector<1x32xf32> to vector<1x32xf32>
    %265 = vector.broadcast %264 : vector<1x32xf32> to vector<8x32xf32>
    %c0_100 = arith.constant 0 : index
    %c0_101 = arith.constant 0 : index
    %c32 = arith.constant 32 : index
    %266 = vector.load %arg6[%c0_100, %c0_101, %c32] : memref<4x8x64xf32, #tpu.memory_space<vmem>>, vector<1x8x32xf32>
    %267 = vector.shape_cast %266 : vector<1x8x32xf32> to vector<8x32xf32>
    %268 = vector.shape_cast %265 : vector<8x32xf32> to vector<1x8x32xf32>
    tpu.vector_store %arg6[%c0_100, %c0_101, %c32], %268 {strides = array<i32>} : memref<4x8x64xf32, #tpu.memory_space<vmem>>, vector<1x8x32xf32>,
    %269 = vector.extract_strided_slice %256 {offsets = [8, 0], sizes = [8, 32], strides = [1, 1]} : vector<32x32xf32> to vector<8x32xf32>
    %cst_102 = arith.constant dense<0.000000e+00> : vector<32xf32>
    %270 = vector.multi_reduction <add>, %269, %cst_102 [0] : vector<8x32xf32> to vector<32xf32>
    %271 = vector.shape_cast %270 : vector<32xf32> to vector<1x32xf32>
    %272 = vector.extract_strided_slice %214 {offsets = [8, 0], sizes = [8, 32], strides = [1, 1]} : vector<32x32xf32> to vector<8x32xf32>
    %c1_103 = arith.constant 1 : index
    %c0_104 = arith.constant 0 : index
    %c0_105 = arith.constant 0 : index
    %273 = vector.load %arg6[%c1_103, %c0_104, %c0_105] : memref<4x8x64xf32, #tpu.memory_space<vmem>>, vector<1x8x32xf32>
    %274 = vector.shape_cast %273 : vector<1x8x32xf32> to vector<8x32xf32>
    %275 = vector.shape_cast %272 : vector<8x32xf32> to vector<1x8x32xf32>
    tpu.vector_store %arg6[%c1_103, %c0_104, %c0_105], %275 {strides = array<i32>} : memref<4x8x64xf32, #tpu.memory_space<vmem>>, vector<1x8x32xf32>,
    %276 = vector.shape_cast %271 : vector<1x32xf32> to vector<1x32xf32>
    %277 = vector.broadcast %276 : vector<1x32xf32> to vector<8x32xf32>
    %c1_106 = arith.constant 1 : index
    %c0_107 = arith.constant 0 : index
    %c32_108 = arith.constant 32 : index
    %278 = vector.load %arg6[%c1_106, %c0_107, %c32_108] : memref<4x8x64xf32, #tpu.memory_space<vmem>>, vector<1x8x32xf32>
    %279 = vector.shape_cast %278 : vector<1x8x32xf32> to vector<8x32xf32>
    %280 = vector.shape_cast %277 : vector<8x32xf32> to vector<1x8x32xf32>
    tpu.vector_store %arg6[%c1_106, %c0_107, %c32_108], %280 {strides = array<i32>} : memref<4x8x64xf32, #tpu.memory_space<vmem>>, vector<1x8x32xf32>,
    %281 = vector.extract_strided_slice %256 {offsets = [16, 0], sizes = [8, 32], strides = [1, 1]} : vector<32x32xf32> to vector<8x32xf32>
    %cst_109 = arith.constant dense<0.000000e+00> : vector<32xf32>
    %282 = vector.multi_reduction <add>, %281, %cst_109 [0] : vector<8x32xf32> to vector<32xf32>
    %283 = vector.shape_cast %282 : vector<32xf32> to vector<1x32xf32>
    %284 = vector.extract_strided_slice %214 {offsets = [16, 0], sizes = [8, 32], strides = [1, 1]} : vector<32x32xf32> to vector<8x32xf32>
    %c2_110 = arith.constant 2 : index
    %c0_111 = arith.constant 0 : index
    %c0_112 = arith.constant 0 : index
    %285 = vector.load %arg6[%c2_110, %c0_111, %c0_112] : memref<4x8x64xf32, #tpu.memory_space<vmem>>, vector<1x8x32xf32>
    %286 = vector.shape_cast %285 : vector<1x8x32xf32> to vector<8x32xf32>
    %287 = vector.shape_cast %284 : vector<8x32xf32> to vector<1x8x32xf32>
    tpu.vector_store %arg6[%c2_110, %c0_111, %c0_112], %287 {strides = array<i32>} : memref<4x8x64xf32, #tpu.memory_space<vmem>>, vector<1x8x32xf32>,
    %288 = vector.shape_cast %283 : vector<1x32xf32> to vector<1x32xf32>
    %289 = vector.broadcast %288 : vector<1x32xf32> to vector<8x32xf32>
    %c2_113 = arith.constant 2 : index
    %c0_114 = arith.constant 0 : index
    %c32_115 = arith.constant 32 : index
    %290 = vector.load %arg6[%c2_113, %c0_114, %c32_115] : memref<4x8x64xf32, #tpu.memory_space<vmem>>, vector<1x8x32xf32>
    %291 = vector.shape_cast %290 : vector<1x8x32xf32> to vector<8x32xf32>
    %292 = vector.shape_cast %289 : vector<8x32xf32> to vector<1x8x32xf32>
    tpu.vector_store %arg6[%c2_113, %c0_114, %c32_115], %292 {strides = array<i32>} : memref<4x8x64xf32, #tpu.memory_space<vmem>>, vector<1x8x32xf32>,
    %293 = vector.extract_strided_slice %256 {offsets = [24, 0], sizes = [8, 32], strides = [1, 1]} : vector<32x32xf32> to vector<8x32xf32>
    %cst_116 = arith.constant dense<0.000000e+00> : vector<32xf32>
    %294 = vector.multi_reduction <add>, %293, %cst_116 [0] : vector<8x32xf32> to vector<32xf32>
    %295 = vector.shape_cast %294 : vector<32xf32> to vector<1x32xf32>
    %296 = vector.extract_strided_slice %214 {offsets = [24, 0], sizes = [8, 32], strides = [1, 1]} : vector<32x32xf32> to vector<8x32xf32>
    %c3_117 = arith.constant 3 : index
    %c0_118 = arith.constant 0 : index
    %c0_119 = arith.constant 0 : index
    %297 = vector.load %arg6[%c3_117, %c0_118, %c0_119] : memref<4x8x64xf32, #tpu.memory_space<vmem>>, vector<1x8x32xf32>
    %298 = vector.shape_cast %297 : vector<1x8x32xf32> to vector<8x32xf32>
    %299 = vector.shape_cast %296 : vector<8x32xf32> to vector<1x8x32xf32>
    tpu.vector_store %arg6[%c3_117, %c0_118, %c0_119], %299 {strides = array<i32>} : memref<4x8x64xf32, #tpu.memory_space<vmem>>, vector<1x8x32xf32>,
    %300 = vector.shape_cast %295 : vector<1x32xf32> to vector<1x32xf32>
    %301 = vector.broadcast %300 : vector<1x32xf32> to vector<8x32xf32>
    %c3_120 = arith.constant 3 : index
    %c0_121 = arith.constant 0 : index
    %c32_122 = arith.constant 32 : index
    %302 = vector.load %arg6[%c3_120, %c0_121, %c32_122] : memref<4x8x64xf32, #tpu.memory_space<vmem>>, vector<1x8x32xf32>
    %303 = vector.shape_cast %302 : vector<1x8x32xf32> to vector<8x32xf32>
    %304 = vector.shape_cast %301 : vector<8x32xf32> to vector<1x8x32xf32>
    tpu.vector_store %arg6[%c3_120, %c0_121, %c32_122], %304 {strides = array<i32>} : memref<4x8x64xf32, #tpu.memory_space<vmem>>, vector<1x8x32xf32>,
    return
  }
  func.func @transform_0(%arg0: i32) -> (i32, i32, i32) {
    %c0_i32 = arith.constant 0 : i32
    %c0_i32_0 = arith.constant 0 : i32
    %c0_i32_1 = arith.constant 0 : i32
    return %arg0, %c0_i32, %c0_i32_0 : i32, i32, i32
  }
  func.func @transform_1(%arg0: i32) -> (i32, i32) {
    %c0_i32 = arith.constant 0 : i32
    %c0_i32_0 = arith.constant 0 : i32
    %c0_i32_1 = arith.constant 0 : i32
    return %c0_i32, %c0_i32_0 : i32, i32
  }
  func.func @transform_2(%arg0: i32) -> (i32, i32, i32) {
    %c0_i32 = arith.constant 0 : i32
    %c0_i32_0 = arith.constant 0 : i32
    %c0_i32_1 = arith.constant 0 : i32
    %c0_i32_2 = arith.constant 0 : i32
    return %c0_i32, %c0_i32_0, %c0_i32_1 : i32, i32, i32
  }
  func.func @transform_3(%arg0: i32) -> (i32, i32) {
    %c0_i32 = arith.constant 0 : i32
    %c0_i32_0 = arith.constant 0 : i32
    %c0_i32_1 = arith.constant 0 : i32
    return %c0_i32, %c0_i32_0 : i32, i32
  }
  func.func @transform_4(%arg0: i32) -> (i32, i32) {
    %c0_i32 = arith.constant 0 : i32
    %c0_i32_0 = arith.constant 0 : i32
    %c0_i32_1 = arith.constant 0 : i32
    return %c0_i32, %c0_i32_0 : i32, i32
  }
  func.func @transform_5(%arg0: i32) -> (i32, i32, i32) {
    %c0_i32 = arith.constant 0 : i32
    %c0_i32_0 = arith.constant 0 : i32
    %c0_i32_1 = arith.constant 0 : i32
    return %arg0, %c0_i32, %c0_i32_0 : i32, i32, i32
  }
}

</mosaic_0001>

<bundles_post_ra>
// kernel: tpu_custom_call.1
= control target key start
LH: loop header
LB: loop body
LE: loop exit
PB: predicated region body
PF: predicated region fallthrough
CT: control target
= control target key end

     0   :  { %10 = vsyncpa [#allocation3], 0  ;;  %s2359_s0 = inlined_call_operand.hbm [shape: f32[8,8,8], index: 0, kind: input, shape index: {}]   ;;  %s2360_s1 = inlined_call_operand.hbm [shape: f32[1,32], index: 1, kind: input, shape index: {}]   ;;  %s2361_s2 = inlined_call_operand.hbm [shape: f32[2,32,32], index: 2, kind: input, shape index: {}]   ;;  %s2362_s3 = inlined_call_operand.hbm [shape: f32[3,32], index: 3, kind: input, shape index: {}]   ;;  %s2363_s4 = inlined_call_operand.hbm [shape: f32[32,32], index: 4, kind: input, shape index: {}]   ;;  %s2364_s5 = inlined_call_operand.hbm [shape: f32[8,8,64], index: 5, kind: output, shape index: {}]  }
   0x1   :  { %12 = vsyncpa [#allocation3 + $0x1], 0 }
   0x2   :  { %13 = vsyncpa [#allocation6], 0 }
   0x3   :  { %14 = vsyncpa [#allocation9], 0 }
   0x4   :  { %15 = vsyncpa [#allocation4], 0 }
   0x5   :  { %17 = vsyncpa [#allocation4 + $0x1], 0  ;;  %s1828_s18 = smov 0   ;;  %s1830_s19 = smov 0  }
   0x6   :  { %s1832_s20 = smov 0   ;;  %s1834_s21 = smov 0  }
   0x7 LB: > { %s1849_s22 = sadd.s32 4294967295, %s1786_s21   ;;  %s1347_s23 = sadd.s32 4294967294, %s1786_s21   ;;  %s1786_s21 = sphi %s1834_s21, %s2402_s21   ;;  %s1782_s20 = sphi %s1832_s20, %s2401_s20   ;;  %s1778_s19 = sphi %s1830_s19, %s2400_s19   ;;  %s1774_s18 = sphi %s1828_s18, %s2399_s18  }
   0x8   : > { %p43_p0 = scmp.ne.s32.totalorder %s1778_s19, %s1774_s18  ;;  %p44_p1 = scmp.eq.s32.totalorder %s1849_s22, 0 }
   0x9   : > { %p151_p2 = scmp.eq.s32.totalorder %s1849_s22, 1  ;;  %p157_p3 = scmp.eq.s32.totalorder %s1347_s23, 1 }
   0xa   : > { %p1858_p4 = por %p44_p1, %p43_p0  ;;  %p1348_p5 = scmp.ge.s32.totalorder %s1786_s21, 1 }
   0xb   : > { %p1863_p6 = por %p157_p3, %p43_p0  ;;  %p164_p7 = scmp.lt.s32.totalorder %s1786_s21, 3 }
   0xc   : > { %s176_s28 = sshll.u32 %s2360_s1, 4  ;;  %s1788_s30 = smov [#allocation5]   ;;  %s177_s28 = int_to_ptr.hbm [resolvable:$true] %s176_s28 }
   0xd   : > { %p1871_p8 = pnand %p1348_p5, %p164_p7  ;;  %s178_s6 = sshll.u32 %s1788_s30, 4  ;;  %s179_s6 = int_to_ptr.vmem [resolvable:$true] %s178_s6 }
   0xe   : > { %s202_s9 = sshll.u32 %s2362_s3, 4  ;;  %s187_s13 = sshll.u32 %s2361_s2, 4  ;;  %s203_s9 = int_to_ptr.hbm [resolvable:$true] %s202_s9  ;;  %s188_s13 = int_to_ptr.hbm [resolvable:$true] %s187_s13 }
   0xf   : > { %p1429_p10 = pneg %p1871_p8  ;;  %s1789_s14 = smov [#allocation8]  }
  0x10   : > { %s204_s15 = sshll.u32 %s1789_s14, 4  ;;  %s1790_s16 = smov [#allocation7]   ;;  %s205_s15 = int_to_ptr.vmem [resolvable:$true] %s204_s15 }
  0x11   : > { %p1883_p11 = pnand %p1429_p10, %p44_p1  ;;  %s189_s17 = sshll.u32 %s1790_s16, 4  ;;  %s190_s17 = int_to_ptr.vmem [resolvable:$true] %s189_s17 }
  0x12   : > { %s213_s27 = sshll.u32 %s2363_s4, 4  ;;  %s1792_s30 = smov 8   ;;  %s214_s27 = int_to_ptr.hbm [resolvable:$true] %s213_s27 }
  0x13   : > { %1432 = dma.hbm_to_vmem [thread:$0]  (!%p1883_p11), %s177_s28, 16, %s179_s6, [#allocation6]  }
  0x14   : > { %1438 = dma.hbm_to_vmem [thread:$0]  (!%p1883_p11), %s203_s9, 64, %s205_s15, [#allocation9]  }
  0x15   : > { %s2365_s28 = smov 128   ;;  %s1793_s6 = smov [#allocation10]  }
  0x16   : > { %1435 = dma.hbm_to_vmem [thread:$0]  (!%p1883_p11), %s188_s13, 1024, %s190_s17, [#allocation6], %s2365_s28, %s2365_s28, %s1792_s30  }
  0x17   : > { %s215_s7 = sshll.u32 %s1793_s6, 4  ;;  %s1908_s8 = sadd.s32 1, %s1786_s21   ;;  %s216_s7 = int_to_ptr.vmem [resolvable:$true] %s215_s7 }
  0x18   : > { %1441 = dma.hbm_to_vmem [thread:$0]  (!%p1883_p11), %s214_s27, 512, %s216_s7, [#allocation9], %s2365_s28, %s2365_s28, %s1792_s30  }
  0x19   : > { %s30_s9 = sadd.s32 1, %s1782_s20  ;;  %s27_s11 = ssub.s32 %s1786_s21, %s1908_s8 }
  0x1a   : > { %p37_p12 = scmp.ne.s32.totalorder %s1782_s20, %s1778_s19  ;;  %p28_p13 = scmp.eq.s32.totalorder %s27_s11, 0 }
  0x1b   : > { %p38_p0 = scmp.eq.s32.totalorder %s1786_s21, 0  ;;  %p1454_p5 = scmp.lt.s32.totalorder %s1786_s21, 2 }
  0x1c   : > { %p1918_p3 = por %p151_p2, %p37_p12  ;;  %s229_s10 = sand.u32 1, %s1782_s20  }
  0x1d   : > { %s1924_s13 = scalar_select %p28_p13, %s1782_s20, %s30_s9  }
  0x1e   : > { %p39_p7 = por %p38_p0, %p37_p12  ;;  %s1354_s14 = sshll.u32 %s229_s10, 5 }
  0x1f   : > { %s1407_s15 = sshll.u32 %s1786_s21, 5  ;;  %s233_s26 = scalar_lea.vmem [#allocation2], %s1354_s14 }
  0x20   : > { %s238_s23 = scalar_lea.hbm %s2359_s0, %s1407_s15  ;;  %s241_s27 = sshll.u32 %s233_s26, 4  ;;  %s242_s27 = int_to_ptr.vmem [resolvable:$true] %s241_s27 }
  0x21   : > { %s239_s6 = sshll.u32 %s238_s23, 4  ;;  %p1931_p2 = pnand %p1454_p5, %p39_p7  ;;  %s240_s6 = int_to_ptr.hbm [resolvable:$true] %s239_s6 }
  0x22   : > { %s230_s9 = scalar_lea.sflag [#allocation3], %s229_s10  ;;  %s1682_s11 = sshra.s32 %s240_s6, 4  ;;  %s1683_s11 = int_to_ptr.hbm [resolvable:$true] %s1682_s11 }
  0x23   : > { %s1684_s28 = scalar_lea.hbm %s1683_s11, 32  ;;  %p1686_p11 = pneg %p1931_p2 }
  0x24   : > { %p1685_p10 = scmp.ne.s32.totalorder %s1683_s11, %s1684_s28  ;;  %s1689_s16 = scalar_lea.hbm %s2359_s0, 64 }
  0x25   : > { %p1690_p0 = scmp.lt.s32.totalorder %s1683_s11, %s2359_s0  ;;  %p1691_p5 = scmp.lt.s32.totalorder %s1689_s16, %s1684_s28 }
  0x26   : > { %p1687_p12 = pnand %p1686_p11, %p1685_p10 }
  0x27   : > { %p1692_p7 = por %p1691_p5, %p1690_p0 }
  0x28   : > { %p1688_p13 = pneg %p1687_p12 }
  0x2a   : > { %p1693_p9 = pnand %p1692_p7, %p1688_p13 }
  0x2c   : > { %1696 = shalt.err (!%p1693_p9)
}
  0x2d   : > { %s2373_s10 = smov 128   ;;  %253 = sbr.rel (%p1871_p8) target bundleno = 1339 (0x53b), region = 40 }
  0x2e   : > { %1445 = dma.hbm_to_vmem [thread:$0]  (!%p1931_p2), %s240_s6, 512, %s242_s27, %s230_s9, %s2373_s10, %s2373_s10, %s1792_s30  }
  0x2f   : > { %s1951_s26 = sand.u32 (!%p1871_p8), 1, %s1778_s19  }
  0x30   : > { %s1358_s28 = sshll.u32 (!%p1871_p8), %s1951_s26, 5  ;;  %s256_s11 = scalar_lea.sflag (!%p1871_p8), [#allocation3], %s1951_s26 }
  0x31   : > { %s259_s15 = scalar_lea.vmem (!%p1871_p8), [#allocation2], %s1358_s28 }
  0x32   : > { %1757 = dma.done.wait (%p1858_p4), %s256_s11, 512  }
  0x33   : > { %1759 = vsyncadd (%p1858_p4), %s256_s11, 4294966784 }
  0x34   : > { %1761 = dma.done.wait (%p44_p1), [#allocation6], 1040  }
  0x35   : > { %1763 = vsyncadd (%p44_p1), [#allocation6], 4294966256 }
  0x36   : > { %1765 = dma.done.wait (%p44_p1), [#allocation9], 576  }
  0x37   : > { %1767 = vsyncadd (%p44_p1), [#allocation9], 4294966720  ;;  %v309_v0 = vlaneseq  ;;  %v1368_v3 = vld [vmem:[%s259_s15 + $0x10] sm:$0xff]  ;;  %v319_v4 = vld [vmem:[%s259_s15] sm:$0xff]  ;;  %v1794_v6 = vmov 0.0   ;;  %vm2366_vm5 = vcmask 64512  }
  0x38   : > { %v1366_v5 = vld [vmem:[%s259_s15 + $0x8] sm:$0xff]  ;;  %vm525_vm2 = vcmp.ne.f32.partialorder %v1368_v3, 0.0  ;;  %vm527_vm3 = vcmp.lt.f32.partialorder %v1368_v3, 2.0  ;;  %vm320_vm4 = vcmp.ne.f32.partialorder %v319_v4, 0.0  ;;  %vm322_vm7 = vcmp.lt.f32.partialorder %v319_v4, 2.0  ;;  %v1370_v8 = vld [vmem:[%s259_s15 + $0x18] sm:$0xff] }
  0x39   : > { %v310_v1 = vshrl.u32 %v309_v0, 7  ;;  %v312_v2 = vand.u32 127, %v309_v0  ;;  %vm425_vm9 = vcmp.ne.f32.partialorder %v1366_v5, 0.0  ;;  %vm427_vm11 = vcmp.lt.f32.partialorder %v1366_v5, 2.0  ;;  %s2271_s24 = scalar_lea.vmem [#allocation11], %s1358_s28  ;;  %s1795_s29 = smov 32  }
  0x3a   : > { %vm625_vm13 = vcmp.ne.f32.partialorder %v1370_v8, 0.0  ;;  %vm627_vm15 = vcmp.lt.f32.partialorder %v1370_v8, 2.0  ;;  %s1408_s30 = sshll.u32 %s1849_s22, 5  ;;  %s1233_s9 = sshll.u32 %s2271_s24, 4  ;;  %s1234_s9 = int_to_ptr.vmem [resolvable:$true] %s1233_s9 }
  0x3b   : > { %vm314_vm0 = vcmp.eq.s32.totalorder %v310_v1, %v312_v2  ;;  %vm313_vm1 = vcmp.ne.s32.totalorder %v310_v1, %v312_v2  ;;  %s1232_s7 = scalar_lea.hbm %s2364_s5, %s1408_s30  ;;  %s1221_s16 = scalar_lea.sflag [#allocation4], %s1951_s26 }
  0x3c   : > { %v1364_v7 = vsel %vm314_vm0, 1.0, %v1794_v6  ;;  %vm526_vm6 = vmand %vm313_vm1, %vm525_vm2  ;;  %s1235_s14 = sshll.u32 %s1232_s7, 4  ;;  %s1732_s28 = scalar_lea.hbm %s2364_s5, 64  ;;  %s1236_s14 = int_to_ptr.hbm [resolvable:$true] %s1235_s14 }
  0x3d   : > { %vm528_vm8 = vmand %vm526_vm6, %vm527_vm3  ;;  %s1726_s17 = sshra.s32 %s1236_s14, 4  ;;  %s1727_s17 = int_to_ptr.hbm [resolvable:$true] %s1726_s17 }
  0x3e   : > { %v529_v9 = vsel %vm528_vm8, %v1368_v3, 0.0  ;;  %vm321_vm10 = vmand %vm313_vm1, %vm320_vm4  ;;  %s1728_s23 = scalar_lea.hbm %s1727_s17, 32  ;;  %p1733_p9 = scmp.lt.s32.totalorder %s1727_s17, %s2364_s5 }
  0x3f   : > { %v530_v10 = vsel %vm2366_vm5, %v529_v9, 0.0  ;;  %v1972_v11 = vadd.f32 %v1364_v7, %v529_v9  ;;  %vm323_vm12 = vmand %vm321_vm10, %vm322_vm7  ;;  %p1729_p1 = scmp.ne.s32.totalorder %s1727_s17, %s1728_s23  ;;  %p1734_p2 = scmp.lt.s32.totalorder %s1732_s28, %s1728_s23 }
  0x40   : > { %531 = vadd.xlane.f32.xlu1 %v530_v10  ;;  %v324_v12 = vsel %vm323_vm12, %v319_v4, 0.0  ;;  %vm426_vm14 = vmand %vm313_vm1, %vm425_vm9  ;;  %v534_v21 = vrot.slane %v530_v10, 4 }
  0x41   : > { %v326_v13 = vsel %vm2366_vm5, %v324_v12, 0.0  ;;  %v1976_v14 = vadd.f32 %v1364_v7, %v324_v12  ;;  %vm428_vm0 = vmand %vm426_vm14, %vm427_vm11  ;;  %v1996_v12 = vld [vmem:[#allocation5] ss:$0 sm:$0xff]  ;;  %p1730_p4 = pnand %p1729_p1, %p1918_p3  ;;  %p1735_p10 = por %p1734_p2, %p1733_p9 }
  0x42   : > { %327 = vadd.xlane.f32.xlu0 %v326_v13  ;;  %v429_v15 = vsel %vm428_vm0, %v1366_v5, 0.0  ;;  %vm626_vm2 = vmand %vm313_vm1, %vm625_vm13  ;;  %v330_v22 = vrot.slane %v326_v13, 4  ;;  %v535_v23 = vadd.f32 %v534_v21, %v530_v10 }
  0x43   : > { %v1979_v16 = vadd.f32 %v1364_v7, %v429_v15  ;;  %vm628_vm3 = vmand %vm626_vm2, %vm627_vm15  ;;  %v430_v20 = vsel %vm2366_vm5, %v429_v15, 0.0  ;;  %p1731_p8 = pneg %p1730_p4 }
  0x44   : > { %v629_v17 = vsel %vm628_vm3, %v1370_v8, 0.0  ;;  %v331_v24 = vadd.f32 %v330_v22, %v326_v13  ;;  %v536_v25 = vrot.slane %v535_v23, 2  ;;  %v434_v27 = vrot.slane %v430_v20, 4 }
  0x45   : > { %v630_v18 = vsel %vm2366_vm5, %v629_v17, 0.0  ;;  %v1982_v19 = vadd.f32 %v1364_v7, %v629_v17  ;;  %p1736_p11 = pnand %p1735_p10, %p1731_p8 }
  0x46   : > { %v332_v26 = vrot.slane %v331_v24, 2  ;;  %v537_v28 = vadd.f32 %v536_v25, %v535_v23  ;;  %v435_v30 = vadd.f32 %v434_v27, %v430_v20  ;;  %v634_v44 = vrot.slane %v630_v18, 4 }
  0x48   : > { %631 = vadd.xlane.f32.xlu1 %v630_v18  ;;  %v333_v29 = vadd.f32 %v332_v26, %v331_v24  ;;  %v538_v31 = vrot.slane %v537_v28, 1  ;;  %v436_v33 = vrot.slane %v435_v30, 2  ;;  %v635_v47 = vadd.f32 %v634_v44, %v630_v18 }
  0x4a   : > { %431 = vadd.xlane.f32.xlu0 %v430_v20  ;;  %v334_v32 = vrot.slane %v333_v29, 1  ;;  %v539_v34 = vadd.f32 %v538_v31, %v537_v28  ;;  %v437_v36 = vadd.f32 %v436_v33, %v435_v30  ;;  %v636_v52 = vrot.slane %v635_v47, 2 }
  0x4c   : > { %v335_v35 = vadd.f32 %v334_v32, %v333_v29  ;;  %v540_v37 = vadd.f32 1.0, %v539_v34  ;;  %v438_v39 = vrot.slane %v437_v36, 1  ;;  %v637_v58 = vadd.f32 %v636_v52, %v635_v47 }
  0x4e   : > { %v336_v38 = vadd.f32 1.0, %v335_v35  ;;  %1506 = vrsqrt.f32 %v540_v37  ;;  %v439_v40 = vadd.f32 %v438_v39, %v437_v36  ;;  %vm575_vm4 = vcmp.eq.f32.partialorder %v540_v37, inf }
  0x4f   : > { %v578_v0 = vand.u32 2147483648, %v540_v37  ;;  %vm577_vm7 = vcmp.eq.f32.partialorder %v540_v37, 0.0  ;;  %v638_v3 = vrot.slane %v637_v58, 1 }
  0x50   : > { %1508 = vrsqrt.f32 %v336_v38  ;;  %v1985_v43 = vadd.f32 1.0, %v439_v40  ;;  %vm371_vm1 = vcmp.eq.f32.partialorder %v336_v38, inf  ;;  %v374_v62 = vand.u32 2147483648, %v336_v38 }
  0x51   : > { %vm373_vm6 = vcmp.eq.f32.partialorder %v336_v38, 0.0  ;;  %v639_v9 = vadd.f32 %v638_v3, %v637_v58 }
  0x52   : > { %1510 = vrsqrt.f32 %v1985_v43  ;;  %vm475_vm8 = vcmp.eq.f32.partialorder %v1985_v43, inf  ;;  %v478_v33 = vand.u32 2147483648, %v1985_v43  ;;  %vm477_vm9 = vcmp.eq.f32.partialorder %v1985_v43, 0.0 }
  0x53   : > { %v2004_v20 = vadd.f32 1.0, %v639_v9 }
  0x54   : > { %v1507_v41 = vpop.eup %1506 }
  0x55   : > { %v569_v46 = vmul.f32 %v1507_v41, %v540_v37 }
  0x56   : > { %v1509_v42 = vpop.eup %1508 }
  0x57   : > { %v365_v45 = vmul.f32 %v1509_v42, %v336_v38  ;;  %v570_v49 = vmul.f32 %v1507_v41, %v569_v46 }
  0x58   : > { %v1511_v55 = vpop.eup %1510 }
  0x59   : > { %v366_v48 = vmul.f32 %v1509_v42, %v365_v45  ;;  %v571_v51 = vmul.f32 0.5, %v570_v49  ;;  %v469_v61 = vmul.f32 %v1511_v55, %v1985_v43 }
  0x5b   : > { %v367_v50 = vmul.f32 0.5, %v366_v48  ;;  %v572_v54 = vsub.f32 1.5, %v571_v51  ;;  %v470_v2 = vmul.f32 %v1511_v55, %v469_v61 }
  0x5d   : > { %v368_v53 = vsub.f32 1.5, %v367_v50  ;;  %v573_v57 = vmul.f32 %v1507_v41, %v572_v54  ;;  %v471_v5 = vmul.f32 0.5, %v470_v2 }
  0x5f   : > { %v369_v56 = vmul.f32 %v1509_v42, %v368_v53  ;;  %v574_v60 = vmul.f32 %v573_v57, %v540_v37  ;;  %v472_v8 = vsub.f32 1.5, %v471_v5 }
  0x61   : > { %v370_v59 = vmul.f32 %v369_v56, %v336_v38  ;;  %v576_v1 = vsel %vm575_vm4, %v540_v37, %v574_v60  ;;  %v473_v18 = vmul.f32 %v1511_v55, %v472_v8 }
  0x62   : > { %v1991_v6 = vsel %vm577_vm7, %v578_v0, %v576_v1 }
  0x63   : > { %v372_v63 = vsel %vm371_vm1, %v336_v38, %v370_v59  ;;  %v474_v25 = vmul.f32 %v473_v18, %v1985_v43  ;;  %vm585_vm0 = vweird.f32 %v1991_v6 }
  0x64   : > { %v1989_v4 = vsel %vm373_vm6, %v374_v62, %v372_v63 }
  0x65   : > { %1512 = vrcp.f32 %v1989_v4  ;;  %v476_v36 = vsel %vm475_vm8, %v1985_v43, %v474_v25  ;;  %vm381_vm14 = vweird.f32 %v1989_v4  ;;  %v387_v54 = vand.u32 2147483648, %v1989_v4 }
  0x66   : > { %1514 = vrcp.f32 %v1991_v6  ;;  %v2035_v44 = vsel %vm477_vm9, %v478_v33, %v476_v36  ;;  %v385_v3 = vand.u32 2147483647, %v1989_v4  ;;  %v589_v25 = vand.u32 2147483647, %v1991_v6 }
  0x68   : > { %vm2124_vm9 = vcmp.eq.f32.partialorder %v589_v25, 8.507059e+37 }
  0x6b   : > { %v2009_v22 = vpop.eup %1512 }
  0x6c   : > { %v2011_v23 = vpop.eup %1514  ;;  %v377_v28 = vmul.f32 %v2009_v22, %v1989_v4  ;;  %vm382_vm15 = vweird.f32 %v2009_v22 }
  0x6d   : > { %v581_v35 = vmul.f32 %v2011_v23, %v1991_v6  ;;  %vm586_vm2 = vweird.f32 %v2011_v23  ;;  %vm2067_vm3 = vmor %vm381_vm14, %vm382_vm15 }
  0x6e   : > { %v378_v38 = vsub.f32 1.0, %v377_v28  ;;  %vm2099_vm1 = vmor %vm585_vm0, %vm586_vm2 }
  0x6f   : > { %v582_v43 = vsub.f32 1.0, %v581_v35 }
  0x70   : > { %v379_v47 = vmul.f32 %v2009_v22, %v378_v38  ;;  %v491_v38 = vand.u32 2147483648, %v2035_v44 }
  0x71   : > { %v583_v57 = vmul.f32 %v2011_v23, %v582_v43 }
  0x72   : > { %v2056_v59 = vadd.f32 %v2009_v22, %v379_v47 }
  0xb3   : > { %v532_v7 = vpop.xlane.xlu1 %531 }
  0xb4   : > { %v1994_v10 = vadd.f32 1.0, %v532_v7  ;;  %v591_v7 = vand.u32 2147483648, %v1991_v6 }
  0xb5   : > { %v328_v13 = vpop.xlane.xlu0 %327 }
  0xb6   : > { %1516 = vrsqrt.f32 %v1994_v10  ;;  %v2000_v15 = vadd.f32 1.0, %v328_v13  ;;  %v598_v17 = vmul.f32 %v1996_v12, %v1994_v10  ;;  %vm548_vm10 = vcmp.eq.f32.partialorder %v1994_v10, inf }
  0xb7   : > { %vm550_vm11 = vcmp.eq.f32.partialorder %v1994_v10, 0.0  ;;  %v551_v49 = vand.u32 2147483648, %v1994_v10  ;;  %v2109_v28 = vor.u32 1.1754944e-38, %v591_v7 }
  0xb8   : > { %1518 = vrsqrt.f32 %v2000_v15  ;;  %v397_v21 = vmul.f32 %v1996_v12, %v2000_v15  ;;  %617 = vmatpush.msra.mxu2 %v598_v17  ;;  %vm344_vm12 = vcmp.eq.f32.partialorder %v2000_v15, inf  ;;  %vm346_vm13 = vcmp.eq.f32.partialorder %v2000_v15, 0.0 }
  0xb9   : > { %1520 = vrsqrt.f32 %v2004_v20  ;;  %v347_v1 = vand.u32 2147483648, %v2000_v15  ;;  %v2086_v17 = vadd.f32 %v2011_v23, %v583_v57 }
  0xba   : > { %417 = vmatpush.msra.mxu0 %v397_v21  ;;  %v2092_v21 = vor.u32 1.1754944e-38, %v387_v54 }
  0xbb   : > { %v632_v24 = vpop.xlane.xlu1 %631 }
  0xbc   : > { %v1517_v26 = vpop.eup %1516  ;;  %v2015_v27 = vadd.f32 1.0, %v632_v24 }
  0xbd   : > { %v432_v29 = vpop.xlane.xlu0 %431  ;;  %v542_v32 = vmul.f32 %v1517_v26, %v1994_v10 }
  0xbe   : > { %v1519_v30 = vpop.eup %1518  ;;  %v2020_v31 = vadd.f32 1.0, %v432_v29  ;;  %1522 = vrsqrt.f32 %v2015_v27  ;;  %v698_v6 = vmul.f32 %v1996_v12, %v2015_v27  ;;  %vm648_vm7 = vcmp.eq.f32.partialorder %v2015_v27, inf }
  0xbf   : > { %v338_v34 = vmul.f32 %v1519_v30, %v2000_v15  ;;  %v543_v39 = vmul.f32 %v1517_v26, %v542_v32  ;;  %v2033_v41 = vpop.eup %1520  ;;  %v588_v32 = vsel %vm2099_vm1, %v2011_v23, %v2086_v17  ;;  %vm650_vm8 = vcmp.eq.f32.partialorder %v2015_v27, 0.0 }
  0xc0   : > { %1524 = vrsqrt.f32 %v2020_v31  ;;  %v498_v37 = vmul.f32 %v1996_v12, %v2020_v31  ;;  %v669_v52 = vmul.f32 %v2033_v41, %v2004_v20  ;;  %vm448_vm4 = vcmp.eq.f32.partialorder %v2020_v31, inf  ;;  %717 = vmatpush.msrb.mxu0 %v698_v6 }
  0xc1   : > { %v339_v40 = vmul.f32 %v1519_v30, %v338_v34  ;;  %v544_v42 = vmul.f32 0.5, %v543_v39  ;;  %1526 = vrcp.f32 %v2035_v44  ;;  %vm450_vm6 = vcmp.eq.f32.partialorder %v2020_v31, 0.0 }
  0xc2   : > { %517 = vmatpush.msra.mxu1 %v498_v37  ;;  %v670_v0 = vmul.f32 %v2033_v41, %v669_v52  ;;  %v451_v33 = vand.u32 2147483648, %v2020_v31  ;;  %v489_v37 = vand.u32 2147483647, %v2035_v44  ;;  %v651_v39 = vand.u32 2147483648, %v2015_v27 }
  0xc3   : > { %v340_v45 = vmul.f32 0.5, %v339_v40  ;;  %v545_v48 = vsub.f32 1.5, %v544_v42 }
  0xc4   : > { %v2039_v46 = vpop.eup %1522 }
  0xc5   : > { %v642_v50 = vmul.f32 %v2039_v46, %v2015_v27  ;;  %v341_v51 = vsub.f32 1.5, %v340_v45  ;;  %v546_v55 = vmul.f32 %v1517_v26, %v545_v48  ;;  %v671_v26 = vmul.f32 0.5, %v670_v0 }
  0xc6   : > { %v1525_v53 = vpop.eup %1524 }
  0xc7   : > { %v342_v56 = vmul.f32 %v1519_v30, %v341_v51  ;;  %v442_v58 = vmul.f32 %v1525_v53, %v2020_v31  ;;  %v547_v60 = vmul.f32 %v546_v55, %v1994_v10  ;;  %v643_v61 = vmul.f32 %v2039_v46, %v642_v50  ;;  %v2076_v8 = vpop.eup %1526 }
  0xc8   : > { %v481_v30 = vmul.f32 %v2076_v8, %v2035_v44  ;;  %v672_v12 = vsub.f32 1.5, %v671_v26  ;;  %v678_v51 = vand.u32 2147483648, %v2004_v20 }
  0xc9   : > { %v343_v62 = vmul.f32 %v342_v56, %v2000_v15  ;;  %v443_v63 = vmul.f32 %v1525_v53, %v442_v58  ;;  %v549_v5 = vsel %vm548_vm10, %v1994_v10, %v547_v60  ;;  %v644_v24 = vmul.f32 0.5, %v643_v61 }
  0xca   : > { %v2083_v13 = vsel %vm550_vm11, %v551_v49, %v549_v5  ;;  %vm485_vm10 = vweird.f32 %v2035_v44  ;;  %vm2132_vm11 = vcmp.eq.f32.partialorder %v385_v3, 8.507059e+37  ;;  %v482_v43 = vsub.f32 1.0, %v481_v30 }
  0xcb   : > { %v345_v9 = vsel %vm344_vm12, %v2000_v15, %v343_v62  ;;  %v444_v4 = vmul.f32 0.5, %v443_v63  ;;  %1528 = vrcp.f32 %v2083_v13  ;;  %v384_v15 = vsel %vm2067_vm3, %v2009_v22, %v2056_v59 }
  0xcc   : > { %v2090_v18 = vsel %vm346_vm13, %v347_v1, %v345_v9  ;;  %v645_v35 = vsub.f32 1.5, %v644_v24  ;;  %vm675_vm12 = vcmp.eq.f32.partialorder %v2004_v20, inf  ;;  %v673_v50 = vmul.f32 %v2033_v41, %v672_v12 }
  0xcd   : > { %1530 = vrcp.f32 %v2090_v18  ;;  %v445_v29 = vsub.f32 1.5, %v444_v4  ;;  %vm677_vm13 = vcmp.eq.f32.partialorder %v2004_v20, 0.0  ;;  %vm558_vm14 = vweird.f32 %v2083_v13 }
  0xce   : > { %v646_v47 = vmul.f32 %v2039_v46, %v645_v35  ;;  %v360_v54 = vand.u32 2147483648, %v2090_v18  ;;  %v564_v58 = vand.u32 2147483648, %v2083_v13  ;;  %v483_v60 = vmul.f32 %v2076_v8, %v482_v43 }
  0xcf   : > { %v446_v34 = vmul.f32 %v1525_v53, %v445_v29  ;;  %v562_v53 = vand.u32 2147483647, %v2083_v13  ;;  %v674_v63 = vmul.f32 %v673_v50, %v2004_v20  ;;  %v358_v0 = vand.u32 2147483647, %v2090_v18 }
  0xd0   : > { %v647_v56 = vmul.f32 %v646_v47, %v2015_v27  ;;  %vm354_vm2 = vweird.f32 %v2090_v18  ;;  %v565_v7 = vor.u32 1.1754944e-38, %v564_v58  ;;  %v361_v4 = vor.u32 1.1754944e-38, %v360_v54 }
  0xd1   : > { %v1529_v40 = vpop.eup %1528  ;;  %v447_v45 = vmul.f32 %v446_v34, %v2020_v31  ;;  %v676_v9 = vsel %vm675_vm12, %v2004_v20, %v674_v63  ;;  %v484_v24 = vadd.f32 %v2076_v8, %v483_v60  ;;  %v593_v29 = vsel %vm2124_vm9, %v2109_v28, %v588_v32  ;;  %v726_v34 = vld [vmem:[#allocation7 + $0x18] sm:$0xff]  ;;  %v723_v63 = vld [vmem:[#allocation7] sm:$0xff] }
  0xd2   : > { %v554_v49 = vmul.f32 %v1529_v40, %v2083_v13  ;;  %vm559_vm15 = vweird.f32 %v1529_v40  ;;  %v649_v62 = vsel %vm648_vm7, %v2015_v27, %v647_v56  ;;  %vm563_vm7 = vcmp.eq.f32.partialorder %v562_v53, 8.507059e+37 }
  0xd3   : > { %v1531_v48 = vpop.eup %1530  ;;  %v449_v46 = vsel %vm448_vm4, %v2020_v31, %v447_v45  ;;  %v652_v1 = vsel %vm650_vm8, %v651_v39, %v649_v62  ;;  %vm486_vm4 = vweird.f32 %v2076_v8  ;;  %vm359_vm8 = vcmp.eq.f32.partialorder %v358_v0, 8.507059e+37  ;;  %v724_v62 = vld [vmem:[#allocation7 + $0x8] sm:$0xff] }
  0xd4   : > { %v350_v52 = vmul.f32 %v1531_v48, %v2090_v18  ;;  %v555_v55 = vsub.f32 1.0, %v554_v49  ;;  %v2152_v41 = vsel %vm450_vm6, %v451_v33, %v449_v46  ;;  %vm355_vm0 = vweird.f32 %v1531_v48  ;;  %vm560_vm6 = vmor %vm558_vm14, %vm559_vm15 }
  0xd5   : > { %1532 = vrcp.f32 %v2152_v41  ;;  %vm356_vm5 = vmor %vm354_vm2, %vm355_vm0  ;;  %v2175_v18 = vsel %vm677_vm13, %v678_v51, %v676_v9  ;;  %v389_v23 = vsel %vm2132_vm11, %v2092_v21, %v384_v15  ;;  %v464_v15 = vand.u32 2147483648, %v2152_v41 }
  0xd6   : > { %v351_v57 = vsub.f32 1.0, %v350_v52  ;;  %v556_v61 = vmul.f32 %v1529_v40, %v555_v55  ;;  %1534 = vrcp.f32 %v652_v1  ;;  %vm2189_vm12 = vmor %vm485_vm10, %vm486_vm4  ;;  %vm2386_vm3 = vcmask 64512  }
  0xd7   : > { %1536 = vrcp.f32 %v2175_v18  ;;  %v488_v59 = vsel %vm2189_vm12, %v2076_v8, %v484_v24  ;;  %v662_v36 = vand.u32 2147483647, %v652_v1  ;;  %vm2387_vm9 = vmmov %vm2386_vm3  ;;  %vm658_vm10 = vweird.f32 %v652_v1 }
  0xd8   : > { %v352_v31 = vmul.f32 %v1531_v48, %v351_v57  ;;  %v557_v3 = vadd.f32 %v1529_v40, %v556_v61  ;;  %vm458_vm13 = vweird.f32 %v2152_v41  ;;  %v465_v39 = vor.u32 1.1754944e-38, %v464_v15  ;;  %v725_v61 = vld [vmem:[#allocation7 + $0x10] sm:$0xff] }
  0xd9   : > { %vm663_vm2 = vcmp.eq.f32.partialorder %v662_v36, 8.507059e+37  ;;  %vm685_vm4 = vweird.f32 %v2175_v18  ;;  %v691_v49 = vand.u32 2147483648, %v2175_v18  ;;  %v689_v52 = vand.u32 2147483647, %v2175_v18 }
  0xda   : > { %v353_v5 = vadd.f32 %v1531_v48, %v352_v31  ;;  %v561_v27 = vsel %vm560_vm6, %v1529_v40, %v557_v3  ;;  %v1503_v31 = vld [vmem:[#allocation8] ss:$0 sm:$0xff] }
  0xdb   : > { %v1533_v25 = vpop.eup %1532  ;;  %v566_v13 = vsel %vm563_vm7, %v565_v7, %v561_v27  ;;  %vm690_vm12 = vcmp.eq.f32.partialorder %v689_v52, 8.507059e+37 }
  0xdc   : > { %v357_v26 = vsel %vm356_vm5, %v1531_v48, %v353_v5  ;;  %v596_v17 = vmul.f32 %v1972_v11, %v566_v13  ;;  %v454_v10 = vmul.f32 %v1533_v25, %v2152_v41  ;;  %vm2204_vm5 = vcmp.eq.f32.partialorder %v489_v37, 8.507059e+37  ;;  %v1535_v2 = vpop.eup %1534 }
  0xdd   : > { %v362_v30 = vsel %vm359_vm8, %v361_v4, %v357_v26  ;;  %v492_v11 = vor.u32 1.1754944e-38, %v491_v38  ;;  %v654_v6 = vmul.f32 %v1535_v2, %v652_v1  ;;  %vm459_vm1 = vweird.f32 %v1533_v25  ;;  %v1537_v38 = vpop.eup %1536  ;;  %vm2388_vm8 = vmmov %vm2386_vm3 }
  0xde   : > { %v392_v28 = vmul.f32 %v1976_v14, %v362_v30  ;;  %v2209_v33 = vmul.f32 %v596_v17, %v593_v29  ;;  %v455_v22 = vsub.f32 1.0, %v454_v10  ;;  %v462_v14 = vand.u32 2147483647, %v2152_v41  ;;  %vm460_vm14 = vmor %vm458_vm13, %vm459_vm1  ;;  %v859_v29 = vld [vmem:[#allocation7 + $0x38] sm:$0xff]  ;;  %v857_v17 = vld [vmem:[#allocation7 + $0x28] sm:$0xff] }
  0xdf   : > { %v664_v37 = vand.u32 2147483648, %v652_v1  ;;  %v655_v44 = vsub.f32 1.0, %v654_v6  ;;  %vm659_vm11 = vweird.f32 %v1535_v2  ;;  %v493_v12 = vsel %vm2204_vm5, %v492_v11, %v488_v59  ;;  %vm2389_vm5 = vmmov %vm2386_vm3  ;;  %v856_v10 = vld [vmem:[#allocation7 + $0x20] sm:$0xff] }
  0xe0   : > { %v2216_v21 = vmul.f32 %v392_v28, %v389_v23  ;;  %1369 = vmatmul.msk.f32.vlgmr.msra.gmra.mxu2 %vm2386_vm3, %v2209_v33  ;;  %v456_v35 = vmul.f32 %v1533_v25, %v455_v22  ;;  %vm463_vm15 = vcmp.eq.f32.partialorder %v462_v14, 8.507059e+37  ;;  %vm660_vm0 = vmor %vm658_vm10, %vm659_vm11  ;;  %v681_v43 = vmul.f32 %v1537_v38, %v2175_v18  ;;  %v858_v23 = vld [vmem:[#allocation7 + $0x30] sm:$0xff]  ;;  %v1504_v28 = vld [vmem:[#allocation8 + $0x1] ss:$0 sm:$0xff] }
  0xe1   : > { %v656_v40 = vmul.f32 %v1535_v2, %v655_v44  ;;  %v665_v45 = vor.u32 1.1754944e-38, %v664_v37  ;;  %vm686_vm6 = vweird.f32 %v1537_v38  ;;  %v692_v41 = vor.u32 1.1754944e-38, %v691_v49  ;;  %vm2390_vm1 = vmmov %vm2389_vm5 }
  0xe2   : > { %1365 = vmatmul.msk.f32.vlgmr.msra.gmra.mxu0 %vm2387_vm9, %v2216_v21  ;;  %v457_v8 = vadd.f32 %v1533_v25, %v456_v35  ;;  %v682_v51 = vsub.f32 1.0, %v681_v43  ;;  %vm687_vm7 = vmor %vm685_vm4, %vm686_vm6  ;;  %vm728_vm3 = vcmask 261120  }
  0xe3   : > { %753 = vmatpush.msra.mxu0 %v726_v34  ;;  %v657_v48 = vadd.f32 %v1535_v2, %v656_v40  ;;  %vm2391_vm9 = vmmov %vm2390_vm1  ;;  %v1021_v40 = vld [vmem:[#allocation10 + $0x10] sm:$0xff] }
  0xe4   : > { %v461_v42 = vsel %vm460_vm14, %v1533_v25, %v457_v8  ;;  %v683_v55 = vmul.f32 %v1537_v38, %v682_v51  ;;  %vm2392_vm10 = vmmov %vm2390_vm1 }
  0xe5   : > { %v466_v47 = vsel %vm463_vm15, %v465_v39, %v461_v42  ;;  %v661_v53 = vsel %vm660_vm0, %v1535_v2, %v657_v48  ;;  %754 = vmatpush.msra.mxu0 %v725_v61  ;;  %vm2393_vm11 = vmmov %vm2390_vm1  ;;  %v1019_v42 = vld [vmem:[#allocation10] sm:$0xff] }
  0xe6   : > { %v496_v50 = vmul.f32 %v1979_v16, %v466_v47  ;;  %v666_v54 = vsel %vm663_vm2, %v665_v45, %v661_v53  ;;  %v684_v56 = vadd.f32 %v1537_v38, %v683_v55  ;;  %vm2394_vm13 = vmmov %vm2390_vm1  ;;  %v1505_v45 = vld [vmem:[#allocation8 + $0x2] ss:$0 sm:$0xff] }
  0xe7   : > { %v696_v57 = vmul.f32 %v1982_v19, %v666_v54  ;;  %755 = vmatpush.msra.mxu0 %v724_v62  ;;  %vm2395_vm14 = vmmov %vm2390_vm1 }
  0xe8   : > { %v2232_v46 = vmul.f32 %v496_v50, %v493_v12  ;;  %v688_v58 = vsel %vm687_vm7, %v1537_v38, %v684_v56  ;;  %vm2396_vm15 = vmmov %vm2390_vm1  ;;  %v1022_v12 = vld [vmem:[#allocation10 + $0x18] sm:$0xff] }
  0xe9   : > { %v693_v16 = vsel %vm690_vm12, %v692_v41, %v688_v58  ;;  %756 = vmatpush.msra.mxu0 %v723_v63  ;;  %vm2397_vm0 = vmmov %vm2390_vm1 }
  0xea   : > { %1367 = vmatmul.msk.f32.vlgmr.msra.gmra.mxu1 %vm2388_vm8, %v2232_v46  ;;  %v2237_v60 = vmul.f32 %v696_v57, %v693_v16 }
  0xec   : > { %1371 = vmatmul.msk.f32.vlgmr.msrb.gmra.mxu0 %vm2389_vm5, %v2237_v60 }
 0x15f   : > { %v419_v0 = vpop.f32.mrf.mxu0 }
 0x160   : > { %v420_v1 = vadd.f32 %v1503_v31, %v419_v0 }
 0x162   : > { %v422_v3 = vmax.f32 %v420_v1, 0.0 }
 0x163   : > { %v619_v9 = vpop.f32.mrf.mxu2 }
 0x164   : > { %1372 = vmatmul.msk.f32.vlgmr.msra.gmra.mxu0 %vm728_vm3, %v422_v3  ;;  %v620_v4 = vadd.f32 %v1503_v31, %v619_v9 }
 0x166   : > { %v622_v27 = vmax.f32 %v620_v4, 0.0 }
 0x167   : > { %v519_v19 = vpop.f32.mrf.mxu1 }
 0x168   : > { %v520_v5 = vadd.f32 %v1503_v31, %v519_v19 }
 0x169   : > { %v719_v24 = vpop.f32.mrf.mxu0 }
 0x16a   : > { %v522_v7 = vmax.f32 %v520_v5, 0.0  ;;  %v720_v18 = vadd.f32 %v1503_v31, %v719_v24 }
 0x16c   : > { %1373 = vmatmul.msk.f32.gmra.mxu0 %vm728_vm3, %v522_v7  ;;  %v722_v25 = vmax.f32 %v720_v18, 0.0 }
 0x174   : > { %1374 = vmatmul.msk.f32.gmra.mxu0 %vm728_vm3, %v622_v27 }
 0x17c   : > { %1375 = vmatmul.msk.f32.gmra.mxu0 %vm728_vm3, %v722_v25 }
 0x1e1   : > { %v758_v26 = vpop.f32.mrf.mxu0 }
 0x1e2   : > { %786 = vmatpush.msrb.mxu1 %v758_v26 }
 0x1e3   : > { %1376 = vmatmul.msk.f32.vlgmr.msrb.gmra.mxu1 %vm2390_vm1, %v2216_v21 }
 0x1e9   : > { %v761_v13 = vpop.f32.mrf.mxu0 }
 0x1ea   : > { %807 = vmatpush.msrb.mxu2 %v761_v13 }
 0x1eb   : > { %1377 = vmatmul.msk.f32.vlgmr.msrb.gmra.mxu2 %vm2391_vm9, %v2232_v46 }
 0x1ec   : > { %885 = vmatpush.msra.mxu2 %v859_v29 }
 0x1ee   : > { %886 = vmatpush.msra.mxu2 %v858_v23 }
 0x1f0   : > { %887 = vmatpush.msra.mxu2 %v857_v17 }
 0x1f1   : > { %v764_v20 = vpop.f32.mrf.mxu0 }
 0x1f2   : > { %828 = vmatpush.msra.mxu1 %v764_v20  ;;  %888 = vmatpush.msra.mxu2 %v856_v10 }
 0x1f3   : > { %1378 = vmatmul.msk.f32.vlgmr.msra.gmra.mxu1 %vm2392_vm10, %v2209_v33 }
 0x1f9   : > { %v767_v30 = vpop.f32.mrf.mxu0 }
 0x1fa   : > { %849 = vmatpush.msrb.mxu1 %v767_v30 }
 0x1fb   : > { %1379 = vmatmul.msk.f32.vlgmr.msrb.gmra.mxu1 %vm2393_vm11, %v2237_v60 }
 0x260   : > { %v788_v32 = vpop.f32.mrf.mxu1 }
 0x261   : > { %v789_v2 = vadd.f32 %v1504_v28, %v788_v32 }
 0x263   : > { %v791_v22 = vmax.f32 %v789_v2, 0.0 }
 0x265   : > { %1380 = vmatmul.msk.f32.vlgmr.msra.gmra.mxu2 %vm728_vm3, %v791_v22 }
 0x26e   : > { %v809_v59 = vpop.f32.mrf.mxu2 }
 0x26f   : > { %v810_v11 = vadd.f32 %v1504_v28, %v809_v59 }
 0x270   : > { %v830_v14 = vpop.f32.mrf.mxu1 }
 0x271   : > { %v812_v15 = vmax.f32 %v810_v11, 0.0  ;;  %v831_v6 = vadd.f32 %v1504_v28, %v830_v14 }
 0x273   : > { %1381 = vmatmul.msk.f32.gmra.mxu2 %vm728_vm3, %v812_v15  ;;  %v833_v34 = vmax.f32 %v831_v6, 0.0 }
 0x278   : > { %v851_v35 = vpop.f32.mrf.mxu1 }
 0x279   : > { %v852_v36 = vadd.f32 %v1504_v28, %v851_v35 }
 0x27b   : > { %1382 = vmatmul.msk.f32.gmra.mxu2 %vm728_vm3, %v833_v34  ;;  %v854_v37 = vmax.f32 %v852_v36, 0.0 }
 0x283   : > { %1383 = vmatmul.msk.f32.gmra.mxu2 %vm728_vm3, %v854_v37 }
 0x2e8   : > { %v890_v44 = vpop.f32.mrf.mxu2 }
 0x2e9   : > { %918 = vmatpush.msra.mxu3 %v890_v44 }
 0x2ea   : > { %1384 = vmatmul.msk.f32.vlgmr.msra.gmra.mxu3 %vm2394_vm13, %v2216_v21  ;;  %v1020_v21 = vld [vmem:[#allocation10 + $0x8] sm:$0xff] }
 0x2f6   : > { %v893_v8 = vpop.f32.mrf.mxu2 }
 0x2f7   : > { %939 = vmatpush.msra.mxu1 %v893_v8 }
 0x2f8   : > { %1385 = vmatmul.msk.f32.vlgmr.msra.gmra.mxu1 %vm2395_vm14, %v2232_v46 }
 0x2fe   : > { %v896_v38 = vpop.f32.mrf.mxu2 }
 0x2ff   : > { %960 = vmatpush.msrb.mxu3 %v896_v38 }
 0x300   : > { %1386 = vmatmul.msk.f32.vlgmr.msrb.gmra.mxu3 %vm2396_vm15, %v2209_v33 }
 0x301   : > { %1047 = vmatpush.msra.mxu3 %v1022_v12 }
 0x303   : > { %1048 = vmatpush.msra.mxu3 %v1021_v40 }
 0x305   : > { %1049 = vmatpush.msra.mxu3 %v1020_v21 }
 0x306   : > { %v899_v39 = vpop.f32.mrf.mxu2 }
 0x307   : > { %981 = vmatpush.msrb.mxu1 %v899_v39  ;;  %1050 = vmatpush.msra.mxu3 %v1019_v42 }
 0x308   : > { %1387 = vmatmul.msk.f32.vlgmr.msrb.gmra.mxu1 %vm2397_vm0, %v2237_v60 }
 0x36d   : > { %v920_v43 = vpop.f32.mrf.mxu3 }
 0x36e   : > { %v921_v47 = vadd.f32 %v1505_v45, %v920_v43 }
 0x370   : > { %v2265_v48 = vmax.f32 %v921_v47, 0.0 }
 0x372   : > { %v987_v33 = vsel %vm728_vm3, %v2265_v48, 0.0  ;;  %1171 = vst.msk [vmem:[%s2271_s24] sm:$0xff] %vm728_vm3, %v2265_v48 }
 0x373   : > { %v988_v49 = vrot.slane %v987_v33, 4 }
 0x375   : > { %v989_v50 = vadd.f32 %v988_v49, %v987_v33  ;;  %v941_v51 = vpop.f32.mrf.mxu1 }
 0x376   : > { %v942_v53 = vadd.f32 %v1505_v45, %v941_v51 }
 0x377   : > { %v990_v52 = vrot.slane %v989_v50, 2 }
 0x378   : > { %v2276_v54 = vmax.f32 %v942_v53, 0.0 }
 0x379   : > { %v991_v46 = vadd.f32 %v990_v52, %v989_v50 }
 0x37a   : > { %v995_v41 = vsel %vm728_vm3, %v2276_v54, 0.0  ;;  %1396 = vst.msk [vmem:[%s2271_s24 + $0x8] sm:$0xff] %vm728_vm3, %v2276_v54 }
 0x37b   : > { %v992_v55 = vrot.slane %v991_v46, 1  ;;  %v996_v56 = vrot.slane %v995_v41, 4 }
 0x37d   : > { %v993_v57 = vadd.f32 %v992_v55, %v991_v46  ;;  %v997_v58 = vadd.f32 %v996_v56, %v995_v41 }
 0x37f   : > { %v994_v16 = vmul.f32 0.125, %v993_v57  ;;  %v998_v60 = vrot.slane %v997_v58, 2 }
 0x381   : > { %1388 = vmatmul.msk.f32.vlgmr.msra.gmra.mxu3 %vm728_vm3, %v994_v16  ;;  %v999_v61 = vadd.f32 %v998_v60, %v997_v58 }
 0x383   : > { %v962_v62 = vpop.f32.mrf.mxu3  ;;  %v1000_v63 = vrot.slane %v999_v61, 1 }
 0x384   : > { %v963_v31 = vadd.f32 %v1505_v45, %v962_v62 }
 0x385   : > { %v983_v0 = vpop.f32.mrf.mxu1  ;;  %v1001_v1 = vadd.f32 %v1000_v63, %v999_v61 }
 0x386   : > { %v2284_v3 = vmax.f32 %v963_v31, 0.0  ;;  %v984_v19 = vadd.f32 %v1505_v45, %v983_v0 }
 0x387   : > { %v1002_v5 = vmul.f32 0.125, %v1001_v1 }
 0x388   : > { %v1003_v7 = vsel %vm728_vm3, %v2284_v3, 0.0  ;;  %1398 = vst.msk [vmem:[%s2271_s24 + $0x10] sm:$0xff] %vm728_vm3, %v2284_v3  ;;  %v2291_v9 = vmax.f32 %v984_v19, 0.0 }
 0x389   : > { %v1004_v4 = vrot.slane %v1003_v7, 4  ;;  %1389 = vmatmul.msk.f32.gmra.mxu3 %vm728_vm3, %v1002_v5 }
 0x38a   : > { %v1011_v27 = vsel %vm728_vm3, %v2291_v9, 0.0  ;;  %1400 = vst.msk [vmem:[%s2271_s24 + $0x18] sm:$0xff] %vm728_vm3, %v2291_v9 }
 0x38b   : > { %v1012_v24 = vrot.slane %v1011_v27, 4  ;;  %v1005_v18 = vadd.f32 %v1004_v4, %v1003_v7 }
 0x38d   : > { %v1006_v25 = vrot.slane %v1005_v18, 2  ;;  %v1013_v26 = vadd.f32 %v1012_v24, %v1011_v27 }
 0x38f   : > { %v1007_v13 = vadd.f32 %v1006_v25, %v1005_v18  ;;  %v1014_v29 = vrot.slane %v1013_v26, 2 }
 0x391   : > { %v1008_v20 = vrot.slane %v1007_v13, 1  ;;  %v1015_v30 = vadd.f32 %v1014_v29, %v1013_v26 }
 0x393   : > { %v1009_v23 = vadd.f32 %v1008_v20, %v1007_v13  ;;  %v1016_v10 = vrot.slane %v1015_v30, 1 }
 0x395   : > { %v1010_v17 = vmul.f32 0.125, %v1009_v23  ;;  %v1017_v28 = vadd.f32 %v1016_v10, %v1015_v30 }
 0x397   : > { %1390 = vmatmul.msk.f32.gmra.mxu3 %vm728_vm3, %v1010_v17  ;;  %v1018_v32 = vmul.f32 0.125, %v1017_v28 }
 0x39f   : > { %1391 = vmatmul.msk.f32.gmra.mxu3 %vm728_vm3, %v1018_v32 }
 0x404   : > { %v1052_v2 = vpop.f32.mrf.mxu3 }
 0x405   : > { %1538 = vtanh.f32 %v1052_v2 }
 0x40b   : > { %v1539_v22 = vpop.eup %1538 }
 0x40c   : > { %v1068_v59 = vmul.f32 %v1539_v22, %v2265_v48  ;;  %v1055_v11 = vpop.f32.mrf.mxu3 }
 0x40d   : > { %1540 = vtanh.f32 %v1055_v11 }
 0x40e   : > { %v1072_v14 = vsel %vm728_vm3, %v1068_v59, 0.0 }
 0x40f   : > { %1073 = vadd.xlane.f32.xlu2 %v1072_v14 }
 0x413   : > { %v1541_v15 = vpop.eup %1540 }
 0x414   : > { %v1069_v6 = vmul.f32 %v1541_v15, %v2276_v54 }
 0x416   : > { %v1075_v34 = vsel %vm728_vm3, %v1069_v6, 0.0 }
 0x417   : > { %1076 = vadd.xlane.f32.xlu2 %v1075_v34 }
 0x41a   : > { %v1058_v35 = vpop.f32.mrf.mxu3 }
 0x41b   : > { %1542 = vtanh.f32 %v1058_v35 }
 0x421   : > { %v1543_v36 = vpop.eup %1542 }
 0x422   : > { %v1061_v37 = vpop.f32.mrf.mxu3  ;;  %v1070_v44 = vmul.f32 %v1543_v36, %v2284_v3 }
 0x423   : > { %1544 = vtanh.f32 %v1061_v37 }
 0x424   : > { %v1078_v8 = vsel %vm728_vm3, %v1070_v44, 0.0 }
 0x425   : > { %1079 = vadd.xlane.f32.xlu0 %v1078_v8 }
 0x429   : > { %v1545_v38 = vpop.eup %1544 }
 0x42a   : > { %v1071_v39 = vmul.f32 %v1545_v38, %v2291_v9 }
 0x42c   : > { %v1081_v12 = vsel %vm728_vm3, %v1071_v39, 0.0 }
 0x42d   : > { %1082 = vadd.xlane.f32.xlu1 %v1081_v12 }
 0x482   : > { %v1074_v40 = vpop.xlane.xlu2 %1073 }
 0x483   : > { %v1392_v21 = vmul.f32 -1.442695, %v1074_v40 }
 0x485   : > { %1546 = vpow2.f32 %v1392_v21 }
 0x48a   : > { %v1077_v45 = vpop.xlane.xlu2 %1076 }
 0x48b   : > { %v1547_v42 = vpop.eup %1546  ;;  %v1393_v47 = vmul.f32 -1.442695, %v1077_v45 }
 0x48c   : > { %v1096_v43 = vadd.f32 1.0, %v1547_v42 }
 0x48e   : > { %1548 = vrcp.f32 %v1096_v43  ;;  %v1111_v53 = vand.u32 2147483648, %v1096_v43  ;;  %v1109_v41 = vand.u32 2147483647, %v1096_v43  ;;  %vm1105_vm4 = vweird.f32 %v1096_v43 }
 0x48f   : > { %1550 = vpow2.f32 %v1393_v47 }
 0x490   : > { %v1112_v58 = vor.u32 1.1754944e-38, %v1111_v53  ;;  %vm1110_vm7 = vcmp.eq.f32.partialorder %v1109_v41, 8.507059e+37 }
 0x494   : > { %v1549_v33 = vpop.eup %1548 }
 0x495   : > { %v1551_v49 = vpop.eup %1550  ;;  %v1101_v50 = vmul.f32 %v1549_v33, %v1096_v43  ;;  %vm1106_vm2 = vweird.f32 %v1549_v33 }
 0x496   : > { %v1097_v51 = vadd.f32 1.0, %v1551_v49  ;;  %vm1107_vm6 = vmor %vm1105_vm4, %vm1106_vm2  ;;  %vm1176_vm4 = vcmask 523520  }
 0x497   : > { %v1102_v52 = vsub.f32 1.0, %v1101_v50 }
 0x498   : > { %1552 = vrcp.f32 %v1097_v51  ;;  %v1080_v55 = vpop.xlane.xlu0 %1079  ;;  %v1126_v5 = vand.u32 2147483648, %v1097_v51  ;;  %v1124_v18 = vand.u32 2147483647, %v1097_v51  ;;  %vm1120_vm12 = vweird.f32 %v1097_v51 }
 0x499   : > { %v1103_v46 = vmul.f32 %v1549_v33, %v1102_v52  ;;  %v1394_v56 = vmul.f32 -1.442695, %v1080_v55 }
 0x49a   : > { %v1127_v13 = vor.u32 1.1754944e-38, %v1126_v5  ;;  %vm1125_vm1 = vcmp.eq.f32.partialorder %v1124_v18, 8.507059e+37 }
 0x49b   : > { %v1104_v57 = vadd.f32 %v1549_v33, %v1103_v46  ;;  %1554 = vpow2.f32 %v1394_v56 }
 0x49d   : > { %v1108_v16 = vsel %vm1107_vm6, %v1549_v33, %v1104_v57 }
 0x49e   : > { %v1553_v60 = vpop.eup %1552  ;;  %v1113_v61 = vsel %vm1110_vm7, %v1112_v58, %v1108_v16 }
 0x49f   : > { %v1116_v62 = vmul.f32 %v1553_v60, %v1097_v51  ;;  %v1160_v63 = vmul.f32 %v1113_v61, %v2265_v48  ;;  %vm1121_vm8 = vweird.f32 %v1553_v60 }
 0x4a0   : > { %v1083_v0 = vpop.xlane.xlu1 %1082  ;;  %vm1122_vm5 = vmor %vm1120_vm12, %vm1121_vm8 }
 0x4a1   : > { %v1117_v31 = vsub.f32 1.0, %v1116_v62  ;;  %v1164_v1 = vsel %vm728_vm3, %v1160_v63, 0.0  ;;  %v1555_v19 = vpop.eup %1554  ;;  %v1395_v7 = vmul.f32 -1.442695, %v1083_v0 }
 0x4a2   : > { %v1165_v4 = vrot.slane %v1164_v1, 4  ;;  %v1098_v24 = vadd.f32 1.0, %v1555_v19 }
 0x4a3   : > { %v1118_v27 = vmul.f32 %v1553_v60, %v1117_v31  ;;  %1556 = vpow2.f32 %v1395_v7 }
 0x4a4   : > { %v1166_v25 = vadd.f32 %v1165_v4, %v1164_v1  ;;  %1558 = vrcp.f32 %v1098_v24  ;;  %v1141_v6 = vand.u32 2147483648, %v1098_v24  ;;  %vm1135_vm10 = vweird.f32 %v1098_v24 }
 0x4a5   : > { %v1119_v26 = vadd.f32 %v1553_v60, %v1118_v27 }
 0x4a6   : > { %v1167_v48 = vrot.slane %v1166_v25, 2  ;;  %v1142_v8 = vor.u32 1.1754944e-38, %v1141_v6 }
 0x4a7   : > { %v1123_v29 = vsel %vm1122_vm5, %v1553_v60, %v1119_v26 }
 0x4a8   : > { %v1168_v20 = vadd.f32 %v1167_v48, %v1166_v25  ;;  %v1128_v30 = vsel %vm1125_vm1, %v1127_v13, %v1123_v29 }
 0x4a9   : > { %v1161_v23 = vmul.f32 %v1128_v30, %v2276_v54  ;;  %v1557_v17 = vpop.eup %1556  ;;  %v1139_v54 = vand.u32 2147483647, %v1098_v24 }
 0x4aa   : > { %v1169_v10 = vrot.slane %v1168_v20, 1  ;;  %v1559_v28 = vpop.eup %1558  ;;  %v1099_v32 = vadd.f32 1.0, %v1557_v17 }
 0x4ab   : > { %v1178_v2 = vsel %vm728_vm3, %v1161_v23, 0.0  ;;  %v1131_v22 = vmul.f32 %v1559_v28, %v1098_v24  ;;  %vm1136_vm9 = vweird.f32 %v1559_v28  ;;  %vm1140_vm13 = vcmp.eq.f32.partialorder %v1139_v54, 8.507059e+37 }
 0x4ac   : > { %v1170_v59 = vadd.f32 %v1169_v10, %v1168_v20  ;;  %v1179_v11 = vrot.slane %v1178_v2, 4  ;;  %1560 = vrcp.f32 %v1099_v32  ;;  %vm1137_vm11 = vmor %vm1135_vm10, %vm1136_vm9  ;;  %v1156_v43 = vand.u32 2147483648, %v1099_v32 }
 0x4ad   : > { %v1132_v14 = vsub.f32 1.0, %v1131_v22  ;;  %v1154_v49 = vand.u32 2147483647, %v1099_v32  ;;  %vm1150_vm15 = vweird.f32 %v1099_v32 }
 0x4ae   : > { %1173 = vrot.lane.b32.xlu2 %v1170_v59, %s1795_s29  ;;  %v1180_v15 = vadd.f32 %v1179_v11, %v1178_v2  ;;  %v1157_v52 = vor.u32 1.1754944e-38, %v1156_v43 }
 0x4af   : > { %v1133_v34 = vmul.f32 %v1559_v28, %v1132_v14  ;;  %vm1155_vm2 = vcmp.eq.f32.partialorder %v1154_v49, 8.507059e+37 }
 0x4b0   : > { %v1181_v35 = vrot.slane %v1180_v15, 2 }
 0x4b1   : > { %v1134_v37 = vadd.f32 %v1559_v28, %v1133_v34 }
 0x4b2   : > { %v1182_v36 = vadd.f32 %v1181_v35, %v1180_v15  ;;  %v1561_v44 = vpop.eup %1560 }
 0x4b3   : > { %v1146_v38 = vmul.f32 %v1561_v44, %v1099_v32  ;;  %v1138_v12 = vsel %vm1137_vm11, %v1559_v28, %v1134_v37  ;;  %vm1151_vm14 = vweird.f32 %v1561_v44 }
 0x4b4   : > { %v1183_v39 = vrot.slane %v1182_v36, 1  ;;  %v1143_v40 = vsel %vm1140_vm13, %v1142_v8, %v1138_v12  ;;  %vm1152_vm0 = vmor %vm1150_vm15, %vm1151_vm14 }
 0x4b5   : > { %v1147_v21 = vsub.f32 1.0, %v1146_v38  ;;  %v1162_v45 = vmul.f32 %v1143_v40, %v2284_v3 }
 0x4b6   : > { %v1184_v42 = vadd.f32 %v1183_v39, %v1182_v36 }
 0x4b7   : > { %v1148_v47 = vmul.f32 %v1561_v44, %v1147_v21  ;;  %v1192_v33 = vsel %vm728_vm3, %v1162_v45, 0.0 }
 0x4b8   : > { %1188 = vrot.lane.b32.xlu0 %v1184_v42, %s1795_s29  ;;  %v1193_v50 = vrot.slane %v1192_v33, 4 }
 0x4b9   : > { %v1149_v51 = vadd.f32 %v1561_v44, %v1148_v47 }
 0x4ba   : > { %v1194_v53 = vadd.f32 %v1193_v50, %v1192_v33 }
 0x4bb   : > { %v1153_v46 = vsel %vm1152_vm0, %v1561_v44, %v1149_v51 }
 0x4bc   : > { %v1195_v55 = vrot.slane %v1194_v53, 2  ;;  %v1158_v41 = vsel %vm1155_vm2, %v1157_v52, %v1153_v46 }
 0x4bd   : > { %v1163_v3 = vmul.f32 %v1158_v41, %v2291_v9 }
 0x4be   : > { %v1196_v56 = vadd.f32 %v1195_v55, %v1194_v53 }
 0x4bf   : > { %v1206_v57 = vsel %vm728_vm3, %v1163_v3, 0.0 }
 0x4c0   : > { %v1197_v58 = vrot.slane %v1196_v56, 1  ;;  %v1207_v16 = vrot.slane %v1206_v57, 4 }
 0x4c2   : > { %v1198_v60 = vadd.f32 %v1197_v58, %v1196_v56  ;;  %v1208_v61 = vadd.f32 %v1207_v16, %v1206_v57 }
 0x4c4   : > { %1202 = vrot.lane.b32.xlu1 %v1198_v60, %s1795_s29  ;;  %v1209_v62 = vrot.slane %v1208_v61, 2 }
 0x4c6   : > { %v1210_v63 = vadd.f32 %v1209_v62, %v1208_v61 }
 0x4c8   : > { %v1211_v31 = vrot.slane %v1210_v63, 1 }
 0x4ca   : > { %v1212_v0 = vadd.f32 %v1211_v31, %v1210_v63 }
 0x4cc   : > { %1216 = vrot.lane.b32.xlu2 %v1212_v0, %s1795_s29 }
 0x508   : > { %v1174_v9 = vpop.permute.xlu2 %1173 }
 0x509   : > { %1177 = vst.msk [vmem:[%s2271_s24] sm:$0xff] %vm1176_vm4, %v1174_v9 }
 0x526   : > { %v1217_v1 = vpop.permute.xlu2 %1216 }
 0x527   : > { %1401 = vst.msk [vmem:[%s2271_s24 + $0x18] sm:$0xff] %vm1176_vm4, %v1217_v1 }
 0x52a   : > { %v1189_v19 = vpop.permute.xlu0 %1188 }
 0x52b   : > { %1397 = vst.msk [vmem:[%s2271_s24 + $0x8] sm:$0xff] %vm1176_vm4, %v1189_v19 }
 0x536   : > { %v1203_v5 = vpop.permute.xlu1 %1202 }
 0x537   : > { %1399 = vst.msk [vmem:[%s2271_s24 + $0x10] sm:$0xff] %vm1176_vm4, %v1203_v5 }
 0x538   : > { %1739 = shalt.err (!%p1736_p11)
}
 0x539   : > { %s1796_s26 = smov 128   ;;  %s1797_s24 = smov 8  }
 0x53a   : > { %1427 = dma.vmem_to_hbm [thread:$0]  (%p1918_p3), %s1234_s9, 512, %s1236_s14, %s1221_s16, %s1796_s26, %s1796_s26, %s1797_s24  }
 0x53b PF: > { %s1250_s29 = sand.u32 1, %s1774_s18   ;;  %p2398_p12 = scmp.ge.s32.totalorder %s1786_s21, 2 }
 0x53c   : > { %s1251_s30 = scalar_lea.sflag [#allocation4], %s1250_s29 }
 0x53d   : > { %p1447_p13 = pnand %p2398_p12, %p1863_p6 }
 0x53f   : > { %p1448_p0 = pneg %p1447_p13 }
 0x541   : > { %1769 = dma.done.wait (%p1448_p0), %s1251_s30, 512  }
 0x542   : > { %1771 = vsyncadd (%p1448_p0), %s1251_s30, 4294966784  ;;  %p20_p5 = scmp.ge.s32.totalorder %s1908_s8, 4   ;;  %s2399_s18 = smov %s1778_s19 }
 0x543   : > { %s2400_s19 = smov %s1782_s20  ;;  %s2401_s20 = smov %s1924_s13 }
 0x544   : > { %s2402_s21 = smov %s1908_s8  ;;  %22 = sbr.rel (!%p20_p5) target bundleno = 7 (0x7), region = 108 }
 0x549   :  { %1257 = vsyncpa [#allocation3], 1 }
 0x54a   :  { %1259 = vsyncpa [#allocation3 + $0x1], 1 }
 0x54b   :  { %1260 = vsyncpa [#allocation6], 1 }
 0x54c   :  { %1261 = vsyncpa [#allocation9], 1 }
 0x54d   :  { %1262 = vsyncpa [#allocation4], 1 }
 0x54e   :  { %1264 = vsyncpa [#allocation4 + $0x1], 1 }

</bundles_post_ra>
